<compile_context>
chip_gen: v5e
topology: v5e:2x2
jax: 0.10.0
libtpu: 0.0.40
codegen_flags: <defaults>
</compile_context>

<pallas_src>
import functools

import jax
import jax.numpy as jnp
from jax import lax
from jax.experimental import pallas as pl
from jax.experimental.pallas import tpu as pltpu


# Row layout of the packed parameter block (all offsets are multiples of 8).
_R_W1, _R_W2, _R_W3, _R_W4 = 0, 16, 24, 32          # im2col weights (cols 0:72 / 0:144)
_R_B1, _R_B2, _R_B3, _R_W0, _R_B0 = 40, 56, 64, 72, 80   # lane-broadcast bias / scale rows
_PRM_ROWS = 88


# ---------------------------------------------------------------------------
# In-kernel helpers.  Activations are (C, P) with P = H*W on the lane axis.
# ---------------------------------------------------------------------------

def _roll_pixels(x, shift):
    """Circular roll along the flat pixel (lane) axis; np.roll semantics."""
    shift = shift % x.shape[-1]
    if shift == 0:
        return x
    return pltpu.roll(x, shift, axis=1)


def _shift_w(x, dw, w_lo, w_hi, width):
    """y[c, (h, w)] = x[c, (h, (w + dw) mod W)] for dw in {-1, 0, 1}."""
    if dw == 0:
        return x
    main = _roll_pixels(x, -dw)
    if dw > 0:   # wrap happens at w == W - 1
        return jnp.where(w_hi, _roll_pixels(x, width - dw), main)
    else:        # wrap happens at w == 0
        return jnp.where(w_lo, _roll_pixels(x, -width - dw), main)


def _prelu(v, a):
    return jnp.where(v >= 0.0, v, a * v)


def _reversenetc_kernel(x_ref, prm_ref, scal_ref, o_ref, k_ref, *, width, samples):
    p = x_ref.shape[-1]

    col = lax.broadcasted_iota(jnp.int32, (1, p), 1) % width
    w_lo = col == 0
    w_hi = col == (width - 1)

    # SMEM scalars: PReLU alphas and final bias (broadcast for free into VPU ops).
    a1 = scal_ref[0]
    a2 = scal_ref[1]
    a3 = scal_ref[2]
    b4 = scal_ref[3]

    # Static, sublane-aligned slices of the single packed parameter block.
    W1 = prm_ref[_R_W1:_R_W1 + 16, 0:72]    # (16, 9*8)
    W2 = prm_ref[_R_W2:_R_W2 + 8, 0:144]    # (8, 9*16)
    W3 = prm_ref[_R_W3:_R_W3 + 8, 0:72]     # (8, 9*8)  Cout padded 4->8 (zeros)
    W4 = prm_ref[_R_W4:_R_W4 + 8, 0:72]     # (8, 9*8)  only row 0 is the real filter
    B1 = prm_ref[_R_B1:_R_B1 + 16, :]       # lane-broadcast biases (C, P)
    B2 = prm_ref[_R_B2:_R_B2 + 8, :]
    B3 = prm_ref[_R_B3:_R_B3 + 8, :]
    W0 = prm_ref[_R_W0:_R_W0 + 8, :]        # 1x1-conv per-channel scale, lane-broadcast
    B0 = prm_ref[_R_B0:_R_B0 + 8, :]

    def conv3x3(h, w_flat, cin):
        # Write the 9 circularly shifted taps into the shared im2col scratch
        # (tap order: dw major, dh minor — matches the host-side weight packing),
        # then one MXU dot: (Cout, 9*Cin) @ (9*Cin, P).
        t = 0
        for dw in (-1, 0, 1):
            base = _shift_w(h, dw, w_lo, w_hi, width)
            for dh in (-1, 0, 1):
                k_ref[t * cin:(t + 1) * cin, :] = _roll_pixels(base, -dh * width)
                t += 1
        return jnp.dot(w_flat, k_ref[0:9 * cin, :],
                       preferred_element_type=jnp.float32)

    for s in range(samples):                                  # static loop (1 or N)
        x = x_ref[s]                                          # (1, P), lane-dense
        h = jnp.maximum(W0 * x + B0, 0.0)                     # conv0 (1x1) + ReLU -> (8,P)
        h = _prelu(conv3x3(h, W1, 8) + B1, a1)                # conv1 + PReLU -> (16,P)
        h = _prelu(conv3x3(h, W2, 16) + B2, a2)               # conv2 + PReLU -> (8,P)
        h = _prelu(conv3x3(h, W3, 8) + B3, a3)                # conv3 + PReLU -> (8,P; ch 4..7 == 0)
        y = conv3x3(h, W4, 8)[0:1, :] + b4                    # conv4 -> (1,P)
        o_ref[s] = jax.nn.sigmoid(y)


# ---------------------------------------------------------------------------
# Host-side packing & wrapper.
# ---------------------------------------------------------------------------

def _pack_params(params, p):
    """Pack all parameters into one (88, P) aligned f32 block + a (4,) scalar vector."""
    (w0, b0, w1, b1, a1, w2, b2, a2, w3, b3, a3, w4, b4) = params

    def flat_w(w):
        # (3, 3, Cin, Cout) -> (Cout, 9*Cin), K ordered (kw major, kh, ci minor)
        # to match the tap order produced inside the kernel.
        cout = w.shape[-1]
        return jnp.transpose(w, (3, 1, 0, 2)).reshape(cout, -1)

    # Pad conv3's Cout and conv4's Cin from 4 -> 8 with zeros (PReLU(0) == 0, so the
    # padded channels stay exactly zero and contribute nothing to conv4).
    w3p = jnp.pad(w3, ((0, 0), (0, 0), (0, 0), (0, 4)))   # (3,3,8,8)
    b3p = jnp.pad(b3, ((0, 4),))                          # (8,)
    w4p = jnp.pad(w4, ((0, 0), (0, 0), (0, 4), (0, 0)))   # (3,3,8,1)

    def bcast_col(v, rows):
        return jnp.broadcast_to(jnp.reshape(v, (rows, 1)), (rows, p))

    buf = jnp.zeros((_PRM_ROWS, p), jnp.float32)

    def put(b, r0, mat):
        rr, cc = mat.shape
        return b.at[r0:r0 + rr, 0:cc].set(mat.astype(jnp.float32))

    buf = put(buf, _R_W1, flat_w(w1))                 # (16, 72)
    buf = put(buf, _R_W2, flat_w(w2))                 # (8, 144)
    buf = put(buf, _R_W3, flat_w(w3p))                # (8, 72)
    buf = put(buf, _R_W4, flat_w(w4p))                # (1, 72); rows 33..39 stay zero
    buf = put(buf, _R_B1, bcast_col(b1, 16))
    buf = put(buf, _R_B2, bcast_col(b2, 8))
    buf = put(buf, _R_B3, bcast_col(b3p, 8))
    buf = put(buf, _R_W0, bcast_col(w0, 8))           # w0 is (1, 8) -> column of 8
    buf = put(buf, _R_B0, bcast_col(b0, 8))

    scal = jnp.stack([jnp.reshape(a1, ()), jnp.reshape(a2, ()),
                      jnp.reshape(a3, ()), jnp.reshape(b4, ())]).astype(jnp.float32)
    return buf, scal


def _fold_batch_default():
    """Fold the whole batch into one grid step on single-TensorCore chips (v5e/v6e)."""
    try:
        kind = jax.devices()[0].device_kind.lower()
    except Exception:
        return True
    multi_tc = any(tag in kind for tag in ("v7", "7x", "v4", "v5p"))
    return not multi_tc


def reversenetc_forward(x_nchw, params, fold_batch=None):
    """x_nchw: (N, 1, H, W) float32. Returns (N, 1, H, W) float32."""
    n, c, h, w = x_nchw.shape
    assert c == 1
    p = h * w
    assert p % 128 == 0 and p >= 144, "packed layout needs H*W multiple of 128 and >= 144"

    if fold_batch is None:
        fold_batch = _fold_batch_default()
    samples = n if fold_batch else 1          # samples handled per grid step
    grid = (n // samples,)

    x_flat = x_nchw.reshape(n, 1, p).astype(jnp.float32)       # lane-dense last dim
    prm, scal = _pack_params(params, p)

    in_specs = [
        pl.BlockSpec((samples, 1, p), lambda i: (i, 0, 0)),
        pl.BlockSpec((_PRM_ROWS, p), lambda i: (0, 0)),         # single DMA, constant map
        pl.BlockSpec(memory_space=pltpu.MemorySpace.SMEM),      # a1, a2, a3, b4 scalars
    ]

    out = pl.pallas_call(
        functools.partial(_reversenetc_kernel, width=w, samples=samples),
        out_shape=jax.ShapeDtypeStruct((n, 1, p), jnp.float32),
        grid=grid,
        in_specs=in_specs,
        out_specs=pl.BlockSpec((samples, 1, p), lambda i: (i, 0, 0)),
        scratch_shapes=[pltpu.VMEM((144, p), jnp.float32)],     # shared im2col scratch
        compiler_params=pltpu.CompilerParams(
            dimension_semantics=("parallel",)),
    )(x_flat, prm, scal)
    return out.reshape(n, 1, h, w)


# ---------------------------------------------------------------------------
# Parameters & pure-JAX reference (for validation).
# ---------------------------------------------------------------------------

def init_params(key):
    """Deterministic synthetic parameters (PyTorch-like uniform(-1/sqrt(fan_in)))."""
    def u(k, shape, fan_in):
        b = 1.0 / (fan_in ** 0.5)
        return jax.random.uniform(k, shape, jnp.float32, -b, b)

    ks = jax.random.split(key, 10)
    w0 = u(ks[0], (1, 8), 1);             b0 = u(ks[1], (8,), 1)
    w1 = u(ks[2], (3, 3, 8, 16), 8 * 9);  b1 = u(ks[3], (16,), 8 * 9)
    w2 = u(ks[4], (3, 3, 16, 8), 16 * 9); b2 = u(ks[5], (8,), 16 * 9)
    w3 = u(ks[6], (3, 3, 8, 4), 8 * 9);   b3 = u(ks[7], (4,), 8 * 9)
    w4 = u(ks[8], (3, 3, 4, 1), 4 * 9);   b4 = u(ks[9], (1,), 4 * 9)
    a1 = jnp.full((), 0.25, jnp.float32)   # PReLU default init
    a2 = jnp.full((), 0.25, jnp.float32)
    a3 = jnp.full((), 0.25, jnp.float32)
    return (w0, b0, w1, b1, a1, w2, b2, a2, w3, b3, a3, w4, b4)


def ref_forward(x_nchw, params):
    """Pure-JAX reference (XLA convs) used to validate the Pallas kernel."""
    (w0, b0, w1, b1, a1, w2, b2, a2, w3, b3, a3, w4, b4) = params
    x = jnp.transpose(x_nchw, (0, 2, 3, 1)).astype(jnp.float32)   # NHWC

    def conv_circ(x, w, b):
        xp = jnp.pad(x, ((0, 0), (1, 1), (1, 1), (0, 0)), mode="wrap")
        y = lax.conv_general_dilated(xp, w, (1, 1), "VALID",
                                     dimension_numbers=("NHWC", "HWIO", "NHWC"))
        return y + b.reshape(1, 1, 1, -1)

    def prelu(v, a):
        return jnp.where(v >= 0, v, a * v)

    h = jnp.maximum(jnp.einsum("nhwc,cd->nhwd", x, w0) + b0.reshape(1, 1, 1, -1), 0.0)
    h = prelu(conv_circ(h, w1, b1), a1)
    h = prelu(conv_circ(h, w2, b2), a2)
    h = prelu(conv_circ(h, w3, b3), a3)
    y = jax.nn.sigmoid(conv_circ(h, w4, b4))
    return jnp.transpose(y, (0, 3, 1, 2))


if __name__ == "__main__":
    key = jax.random.PRNGKey(0)
    kx, kp = jax.random.split(key)
    # NCHW input like the PyTorch module: (batch=2, channels=1, 16, 16)
    x = jax.random.normal(kx, (2, 1, 16, 16), jnp.float32)
    params = init_params(kp)
    ref = ref_forward(x, params)

    # Default (chip-aware) path.
    out = jax.block_until_ready(reversenetc_forward(x, params))
    assert out.shape == (2, 1, 16, 16)
    err = float(jnp.max(jnp.abs(out - ref)))
    assert err < 5e-4, f"mismatch vs reference: {err}"

    # Also exercise the other batch-handling path (folded vs. batch-parallel grid)
    # so both the single-TC and multi-TC configurations are validated.
    out2 = jax.block_until_ready(
        reversenetc_forward(x, params, fold_batch=(not _fold_batch_default())))
    err2 = float(jnp.max(jnp.abs(out2 - ref)))
    assert err2 < 5e-4, f"mismatch vs reference (alt grid path): {err2}"

    print("KERNEL_OK")
</pallas_src>

<mosaic_0001>
module attributes {stable_mosaic.version = 11 : i64} {
  func.func @_reversenetc_kernel(%arg0: i32, %arg1: memref<2x1x256xf32, #tpu.memory_space<vmem>>, %arg2: memref<88x256xf32, #tpu.memory_space<vmem>>, %arg3: memref<4xf32, #tpu.memory_space<smem>>, %arg4: memref<2x1x256xf32, #tpu.memory_space<vmem>>, %arg5: memref<144x256xf32, #tpu.memory_space<vmem>>) attributes {dimension_semantics = [#tpu.dimension_semantics<parallel>], iteration_bounds = array<i64: 1>, scalar_prefetch = 0 : i64, scratch_operands = 1 : i64, tpu.core_type = #tpu.core_type<tc>, window_params = [{transform_indices = @transform_0, window_bounds = array<i64: 2, 1, 256>}, {pipeline_mode = #tpu.pipeline_mode<synchronous>, transform_indices = @transform_1, window_bounds = array<i64: 88, 256>}, {transform_indices = @transform_2, window_bounds = array<i64: 4>}, {transform_indices = @transform_3, window_bounds = array<i64: 2, 1, 256>}]} {
    %0 = tpu.iota {dimensions = array<i32: 1>} : vector<1x256xi32>
    %c16_i32 = arith.constant 16 : i32
    %c0_i32 = arith.constant 0 : i32
    %1 = arith.cmpi eq, %c16_i32, %c0_i32 : i32
    %c1_i32 = arith.constant 1 : i32
    %2 = arith.select %1, %c1_i32, %c16_i32 : i32
    %3 = vector.broadcast %2 : i32 to vector<1x256xi32>
    %4 = arith.remsi %0, %3 : vector<1x256xi32>
    %c0_i32_0 = arith.constant 0 : i32
    %5 = vector.broadcast %c0_i32_0 : i32 to vector<1x256xi32>
    %6 = arith.cmpi ne, %4, %5 : vector<1x256xi32>
    %c0_i32_1 = arith.constant 0 : i32
    %7 = vector.broadcast %c0_i32_1 : i32 to vector<1x256xi32>
    %8 = arith.cmpi slt, %4, %7 : vector<1x256xi32>
    %c0_i32_2 = arith.constant 0 : i32
    %9 = arith.cmpi slt, %2, %c0_i32_2 : i32
    %10 = vector.broadcast %9 : i1 to vector<1x256xi1>
    %11 = vector.broadcast %10 : vector<1x256xi1> to vector<1x256xi1>
    %12 = arith.xori %8, %11 : vector<1x256xi1>
    %13 = arith.andi %12, %6 : vector<1x256xi1>
    %14 = vector.broadcast %2 : i32 to vector<1x256xi32>
    %15 = arith.addi %4, %14 : vector<1x256xi32>
    %16 = arith.select %13, %15, %4 : vector<1x256xi1>, vector<1x256xi32>
    %c0_i32_3 = arith.constant 0 : i32
    %17 = vector.broadcast %c0_i32_3 : i32 to vector<1x256xi32>
    %18 = arith.cmpi eq, %16, %17 : vector<1x256xi32>
    %c15_i32 = arith.constant 15 : i32
    %19 = vector.broadcast %c15_i32 : i32 to vector<1x256xi32>
    %20 = arith.cmpi eq, %16, %19 : vector<1x256xi32>
    %c0 = arith.constant 0 : index
    %21 = memref.load %arg3[%c0] : memref<4xf32, #tpu.memory_space<smem>>
    %c1 = arith.constant 1 : index
    %22 = memref.load %arg3[%c1] : memref<4xf32, #tpu.memory_space<smem>>
    %c2 = arith.constant 2 : index
    %23 = memref.load %arg3[%c2] : memref<4xf32, #tpu.memory_space<smem>>
    %c3 = arith.constant 3 : index
    %24 = memref.load %arg3[%c3] : memref<4xf32, #tpu.memory_space<smem>>
    %c0_4 = arith.constant 0 : index
    %c0_5 = arith.constant 0 : index
    %25 = vector.load %arg2[%c0_4, %c0_5] : memref<88x256xf32, #tpu.memory_space<vmem>>, vector<16x72xf32>
    %c16 = arith.constant 16 : index
    %c0_6 = arith.constant 0 : index
    %26 = vector.load %arg2[%c16, %c0_6] : memref<88x256xf32, #tpu.memory_space<vmem>>, vector<8x144xf32>
    %c24 = arith.constant 24 : index
    %c0_7 = arith.constant 0 : index
    %27 = vector.load %arg2[%c24, %c0_7] : memref<88x256xf32, #tpu.memory_space<vmem>>, vector<8x72xf32>
    %c32 = arith.constant 32 : index
    %c0_8 = arith.constant 0 : index
    %28 = vector.load %arg2[%c32, %c0_8] : memref<88x256xf32, #tpu.memory_space<vmem>>, vector<8x72xf32>
    %c40 = arith.constant 40 : index
    %c0_9 = arith.constant 0 : index
    %29 = vector.load %arg2[%c40, %c0_9] : memref<88x256xf32, #tpu.memory_space<vmem>>, vector<16x256xf32>
    %c56 = arith.constant 56 : index
    %c0_10 = arith.constant 0 : index
    %30 = vector.load %arg2[%c56, %c0_10] : memref<88x256xf32, #tpu.memory_space<vmem>>, vector<8x256xf32>
    %c64 = arith.constant 64 : index
    %c0_11 = arith.constant 0 : index
    %31 = vector.load %arg2[%c64, %c0_11] : memref<88x256xf32, #tpu.memory_space<vmem>>, vector<8x256xf32>
    %c72 = arith.constant 72 : index
    %c0_12 = arith.constant 0 : index
    %32 = vector.load %arg2[%c72, %c0_12] : memref<88x256xf32, #tpu.memory_space<vmem>>, vector<8x256xf32>
    %c80 = arith.constant 80 : index
    %c0_13 = arith.constant 0 : index
    %33 = vector.load %arg2[%c80, %c0_13] : memref<88x256xf32, #tpu.memory_space<vmem>>, vector<8x256xf32>
    %c0_14 = arith.constant 0 : index
    %c0_15 = arith.constant 0 : index
    %c0_16 = arith.constant 0 : index
    %34 = vector.load %arg1[%c0_14, %c0_15, %c0_16] : memref<2x1x256xf32, #tpu.memory_space<vmem>>, vector<1x1x256xf32>
    %35 = vector.shape_cast %34 : vector<1x1x256xf32> to vector<1x256xf32>
    %36 = vector.broadcast %35 : vector<1x256xf32> to vector<8x256xf32>
    %37 = arith.mulf %32, %36 : vector<8x256xf32>
    %38 = arith.addf %37, %33 : vector<8x256xf32>
    %cst = arith.constant 0.000000e+00 : f32
    %39 = vector.broadcast %cst : f32 to vector<8x256xf32>
    %40 = arith.maximumf %38, %39 : vector<8x256xf32>
    %c1_i32_17 = arith.constant 1 : i32
    %41 = tpu.dynamic_rotate %40 by %c1_i32_17 dim 1 : vector<8x256xf32>, i32 -> vector<8x256xf32>
    %c241_i32 = arith.constant 241 : i32
    %42 = tpu.dynamic_rotate %40 by %c241_i32 dim 1 : vector<8x256xf32>, i32 -> vector<8x256xf32>
    %43 = vector.shape_cast %18 : vector<1x256xi1> to vector<1x256xi1>
    %44 = vector.broadcast %43 : vector<1x256xi1> to vector<8x256xi1>
    %45 = arith.select %44, %42, %41 : vector<8x256xi1>, vector<8x256xf32>
    %c16_i32_18 = arith.constant 16 : i32
    %46 = tpu.dynamic_rotate %45 by %c16_i32_18 dim 1 : vector<8x256xf32>, i32 -> vector<8x256xf32>
    %c0_19 = arith.constant 0 : index
    %c0_20 = arith.constant 0 : index
    %47 = vector.load %arg5[%c0_19, %c0_20] : memref<144x256xf32, #tpu.memory_space<vmem>>, vector<8x256xf32>
    tpu.vector_store %arg5[%c0_19, %c0_20], %46 {strides = array<i32>} : memref<144x256xf32, #tpu.memory_space<vmem>>, vector<8x256xf32>,
    %c8 = arith.constant 8 : index
    %c0_21 = arith.constant 0 : index
    %48 = vector.load %arg5[%c8, %c0_21] : memref<144x256xf32, #tpu.memory_space<vmem>>, vector<8x256xf32>
    tpu.vector_store %arg5[%c8, %c0_21], %45 {strides = array<i32>} : memref<144x256xf32, #tpu.memory_space<vmem>>, vector<8x256xf32>,
    %c240_i32 = arith.constant 240 : i32
    %49 = tpu.dynamic_rotate %45 by %c240_i32 dim 1 : vector<8x256xf32>, i32 -> vector<8x256xf32>
    %c16_22 = arith.constant 16 : index
    %c0_23 = arith.constant 0 : index
    %50 = vector.load %arg5[%c16_22, %c0_23] : memref<144x256xf32, #tpu.memory_space<vmem>>, vector<8x256xf32>
    tpu.vector_store %arg5[%c16_22, %c0_23], %49 {strides = array<i32>} : memref<144x256xf32, #tpu.memory_space<vmem>>, vector<8x256xf32>,
    %c16_i32_24 = arith.constant 16 : i32
    %51 = tpu.dynamic_rotate %40 by %c16_i32_24 dim 1 : vector<8x256xf32>, i32 -> vector<8x256xf32>
    %c24_25 = arith.constant 24 : index
    %c0_26 = arith.constant 0 : index
    %52 = vector.load %arg5[%c24_25, %c0_26] : memref<144x256xf32, #tpu.memory_space<vmem>>, vector<8x256xf32>
    tpu.vector_store %arg5[%c24_25, %c0_26], %51 {strides = array<i32>} : memref<144x256xf32, #tpu.memory_space<vmem>>, vector<8x256xf32>,
    %c32_27 = arith.constant 32 : index
    %c0_28 = arith.constant 0 : index
    %53 = vector.load %arg5[%c32_27, %c0_28] : memref<144x256xf32, #tpu.memory_space<vmem>>, vector<8x256xf32>
    tpu.vector_store %arg5[%c32_27, %c0_28], %40 {strides = array<i32>} : memref<144x256xf32, #tpu.memory_space<vmem>>, vector<8x256xf32>,
    %c240_i32_29 = arith.constant 240 : i32
    %54 = tpu.dynamic_rotate %40 by %c240_i32_29 dim 1 : vector<8x256xf32>, i32 -> vector<8x256xf32>
    %c40_30 = arith.constant 40 : index
    %c0_31 = arith.constant 0 : index
    %55 = vector.load %arg5[%c40_30, %c0_31] : memref<144x256xf32, #tpu.memory_space<vmem>>, vector<8x256xf32>
    tpu.vector_store %arg5[%c40_30, %c0_31], %54 {strides = array<i32>} : memref<144x256xf32, #tpu.memory_space<vmem>>, vector<8x256xf32>,
    %c255_i32 = arith.constant 255 : i32
    %56 = tpu.dynamic_rotate %40 by %c255_i32 dim 1 : vector<8x256xf32>, i32 -> vector<8x256xf32>
    %c15_i32_32 = arith.constant 15 : i32
    %57 = tpu.dynamic_rotate %40 by %c15_i32_32 dim 1 : vector<8x256xf32>, i32 -> vector<8x256xf32>
    %58 = vector.shape_cast %20 : vector<1x256xi1> to vector<1x256xi1>
    %59 = vector.broadcast %58 : vector<1x256xi1> to vector<8x256xi1>
    %60 = arith.select %59, %57, %56 : vector<8x256xi1>, vector<8x256xf32>
    %c16_i32_33 = arith.constant 16 : i32
    %61 = tpu.dynamic_rotate %60 by %c16_i32_33 dim 1 : vector<8x256xf32>, i32 -> vector<8x256xf32>
    %c48 = arith.constant 48 : index
    %c0_34 = arith.constant 0 : index
    %62 = vector.load %arg5[%c48, %c0_34] : memref<144x256xf32, #tpu.memory_space<vmem>>, vector<8x256xf32>
    tpu.vector_store %arg5[%c48, %c0_34], %61 {strides = array<i32>} : memref<144x256xf32, #tpu.memory_space<vmem>>, vector<8x256xf32>,
    %c56_35 = arith.constant 56 : index
    %c0_36 = arith.constant 0 : index
    %63 = vector.load %arg5[%c56_35, %c0_36] : memref<144x256xf32, #tpu.memory_space<vmem>>, vector<8x256xf32>
    tpu.vector_store %arg5[%c56_35, %c0_36], %60 {strides = array<i32>} : memref<144x256xf32, #tpu.memory_space<vmem>>, vector<8x256xf32>,
    %c240_i32_37 = arith.constant 240 : i32
    %64 = tpu.dynamic_rotate %60 by %c240_i32_37 dim 1 : vector<8x256xf32>, i32 -> vector<8x256xf32>
    %c64_38 = arith.constant 64 : index
    %c0_39 = arith.constant 0 : index
    %65 = vector.load %arg5[%c64_38, %c0_39] : memref<144x256xf32, #tpu.memory_space<vmem>>, vector<8x256xf32>
    tpu.vector_store %arg5[%c64_38, %c0_39], %64 {strides = array<i32>} : memref<144x256xf32, #tpu.memory_space<vmem>>, vector<8x256xf32>,
    %c0_40 = arith.constant 0 : index
    %c0_41 = arith.constant 0 : index
    %66 = vector.load %arg5[%c0_40, %c0_41] : memref<144x256xf32, #tpu.memory_space<vmem>>, vector<72x256xf32>
    %cst_42 = arith.constant dense<0.000000e+00> : vector<16x256xf32>
    %67 = tpu.matmul %25, %66, %cst_42 {dimension_numbers = #tpu.dot_dimension_numbers<[1], [0], [0], [1], [0, 0, 1, 1], [], []>} : vector<16x72xf32>, vector<72x256xf32>, vector<16x256xf32> -> vector<16x256xf32>
    %68 = arith.addf %67, %29 : vector<16x256xf32>
    %cst_43 = arith.constant 0.000000e+00 : f32
    %69 = vector.broadcast %cst_43 : f32 to vector<16x256xf32>
    %70 = arith.cmpf oge, %68, %69 : vector<16x256xf32>
    %71 = vector.broadcast %21 : f32 to vector<16x256xf32>
    %72 = arith.mulf %71, %68 : vector<16x256xf32>
    %73 = arith.select %70, %68, %72 : vector<16x256xi1>, vector<16x256xf32>
    %c1_i32_44 = arith.constant 1 : i32
    %74 = tpu.dynamic_rotate %73 by %c1_i32_44 dim 1 : vector<16x256xf32>, i32 -> vector<16x256xf32>
    %c241_i32_45 = arith.constant 241 : i32
    %75 = tpu.dynamic_rotate %73 by %c241_i32_45 dim 1 : vector<16x256xf32>, i32 -> vector<16x256xf32>
    %76 = vector.shape_cast %18 : vector<1x256xi1> to vector<1x256xi1>
    %77 = vector.broadcast %76 : vector<1x256xi1> to vector<16x256xi1>
    %78 = arith.select %77, %75, %74 : vector<16x256xi1>, vector<16x256xf32>
    %c16_i32_46 = arith.constant 16 : i32
    %79 = tpu.dynamic_rotate %78 by %c16_i32_46 dim 1 : vector<16x256xf32>, i32 -> vector<16x256xf32>
    %c0_47 = arith.constant 0 : index
    %c0_48 = arith.constant 0 : index
    %80 = vector.load %arg5[%c0_47, %c0_48] : memref<144x256xf32, #tpu.memory_space<vmem>>, vector<16x256xf32>
    tpu.vector_store %arg5[%c0_47, %c0_48], %79 {strides = array<i32>} : memref<144x256xf32, #tpu.memory_space<vmem>>, vector<16x256xf32>,
    %c16_49 = arith.constant 16 : index
    %c0_50 = arith.constant 0 : index
    %81 = vector.load %arg5[%c16_49, %c0_50] : memref<144x256xf32, #tpu.memory_space<vmem>>, vector<16x256xf32>
    tpu.vector_store %arg5[%c16_49, %c0_50], %78 {strides = array<i32>} : memref<144x256xf32, #tpu.memory_space<vmem>>, vector<16x256xf32>,
    %c240_i32_51 = arith.constant 240 : i32
    %82 = tpu.dynamic_rotate %78 by %c240_i32_51 dim 1 : vector<16x256xf32>, i32 -> vector<16x256xf32>
    %c32_52 = arith.constant 32 : index
    %c0_53 = arith.constant 0 : index
    %83 = vector.load %arg5[%c32_52, %c0_53] : memref<144x256xf32, #tpu.memory_space<vmem>>, vector<16x256xf32>
    tpu.vector_store %arg5[%c32_52, %c0_53], %82 {strides = array<i32>} : memref<144x256xf32, #tpu.memory_space<vmem>>, vector<16x256xf32>,
    %c16_i32_54 = arith.constant 16 : i32
    %84 = tpu.dynamic_rotate %73 by %c16_i32_54 dim 1 : vector<16x256xf32>, i32 -> vector<16x256xf32>
    %c48_55 = arith.constant 48 : index
    %c0_56 = arith.constant 0 : index
    %85 = vector.load %arg5[%c48_55, %c0_56] : memref<144x256xf32, #tpu.memory_space<vmem>>, vector<16x256xf32>
    tpu.vector_store %arg5[%c48_55, %c0_56], %84 {strides = array<i32>} : memref<144x256xf32, #tpu.memory_space<vmem>>, vector<16x256xf32>,
    %c64_57 = arith.constant 64 : index
    %c0_58 = arith.constant 0 : index
    %86 = vector.load %arg5[%c64_57, %c0_58] : memref<144x256xf32, #tpu.memory_space<vmem>>, vector<16x256xf32>
    tpu.vector_store %arg5[%c64_57, %c0_58], %73 {strides = array<i32>} : memref<144x256xf32, #tpu.memory_space<vmem>>, vector<16x256xf32>,
    %c240_i32_59 = arith.constant 240 : i32
    %87 = tpu.dynamic_rotate %73 by %c240_i32_59 dim 1 : vector<16x256xf32>, i32 -> vector<16x256xf32>
    %c80_60 = arith.constant 80 : index
    %c0_61 = arith.constant 0 : index
    %88 = vector.load %arg5[%c80_60, %c0_61] : memref<144x256xf32, #tpu.memory_space<vmem>>, vector<16x256xf32>
    tpu.vector_store %arg5[%c80_60, %c0_61], %87 {strides = array<i32>} : memref<144x256xf32, #tpu.memory_space<vmem>>, vector<16x256xf32>,
    %c255_i32_62 = arith.constant 255 : i32
    %89 = tpu.dynamic_rotate %73 by %c255_i32_62 dim 1 : vector<16x256xf32>, i32 -> vector<16x256xf32>
    %c15_i32_63 = arith.constant 15 : i32
    %90 = tpu.dynamic_rotate %73 by %c15_i32_63 dim 1 : vector<16x256xf32>, i32 -> vector<16x256xf32>
    %91 = vector.shape_cast %20 : vector<1x256xi1> to vector<1x256xi1>
    %92 = vector.broadcast %91 : vector<1x256xi1> to vector<16x256xi1>
    %93 = arith.select %92, %90, %89 : vector<16x256xi1>, vector<16x256xf32>
    %c16_i32_64 = arith.constant 16 : i32
    %94 = tpu.dynamic_rotate %93 by %c16_i32_64 dim 1 : vector<16x256xf32>, i32 -> vector<16x256xf32>
    %c96 = arith.constant 96 : index
    %c0_65 = arith.constant 0 : index
    %95 = vector.load %arg5[%c96, %c0_65] : memref<144x256xf32, #tpu.memory_space<vmem>>, vector<16x256xf32>
    tpu.vector_store %arg5[%c96, %c0_65], %94 {strides = array<i32>} : memref<144x256xf32, #tpu.memory_space<vmem>>, vector<16x256xf32>,
    %c112 = arith.constant 112 : index
    %c0_66 = arith.constant 0 : index
    %96 = vector.load %arg5[%c112, %c0_66] : memref<144x256xf32, #tpu.memory_space<vmem>>, vector<16x256xf32>
    tpu.vector_store %arg5[%c112, %c0_66], %93 {strides = array<i32>} : memref<144x256xf32, #tpu.memory_space<vmem>>, vector<16x256xf32>,
    %c240_i32_67 = arith.constant 240 : i32
    %97 = tpu.dynamic_rotate %93 by %c240_i32_67 dim 1 : vector<16x256xf32>, i32 -> vector<16x256xf32>
    %c128 = arith.constant 128 : index
    %c0_68 = arith.constant 0 : index
    %98 = vector.load %arg5[%c128, %c0_68] : memref<144x256xf32, #tpu.memory_space<vmem>>, vector<16x256xf32>
    tpu.vector_store %arg5[%c128, %c0_68], %97 {strides = array<i32>} : memref<144x256xf32, #tpu.memory_space<vmem>>, vector<16x256xf32>,
    %c0_69 = arith.constant 0 : index
    %c0_70 = arith.constant 0 : index
    %99 = vector.load %arg5[%c0_69, %c0_70] : memref<144x256xf32, #tpu.memory_space<vmem>>, vector<144x256xf32>
    %cst_71 = arith.constant dense<0.000000e+00> : vector<8x256xf32>
    %100 = tpu.matmul %26, %99, %cst_71 {dimension_numbers = #tpu.dot_dimension_numbers<[1], [0], [0], [1], [0, 0, 1, 1], [], []>} : vector<8x144xf32>, vector<144x256xf32>, vector<8x256xf32> -> vector<8x256xf32>
    %101 = arith.addf %100, %30 : vector<8x256xf32>
    %cst_72 = arith.constant 0.000000e+00 : f32
    %102 = vector.broadcast %cst_72 : f32 to vector<8x256xf32>
    %103 = arith.cmpf oge, %101, %102 : vector<8x256xf32>
    %104 = vector.broadcast %22 : f32 to vector<8x256xf32>
    %105 = arith.mulf %104, %101 : vector<8x256xf32>
    %106 = arith.select %103, %101, %105 : vector<8x256xi1>, vector<8x256xf32>
    %c1_i32_73 = arith.constant 1 : i32
    %107 = tpu.dynamic_rotate %106 by %c1_i32_73 dim 1 : vector<8x256xf32>, i32 -> vector<8x256xf32>
    %c241_i32_74 = arith.constant 241 : i32
    %108 = tpu.dynamic_rotate %106 by %c241_i32_74 dim 1 : vector<8x256xf32>, i32 -> vector<8x256xf32>
    %109 = vector.shape_cast %18 : vector<1x256xi1> to vector<1x256xi1>
    %110 = vector.broadcast %109 : vector<1x256xi1> to vector<8x256xi1>
    %111 = arith.select %110, %108, %107 : vector<8x256xi1>, vector<8x256xf32>
    %c16_i32_75 = arith.constant 16 : i32
    %112 = tpu.dynamic_rotate %111 by %c16_i32_75 dim 1 : vector<8x256xf32>, i32 -> vector<8x256xf32>
    %c0_76 = arith.constant 0 : index
    %c0_77 = arith.constant 0 : index
    %113 = vector.load %arg5[%c0_76, %c0_77] : memref<144x256xf32, #tpu.memory_space<vmem>>, vector<8x256xf32>
    tpu.vector_store %arg5[%c0_76, %c0_77], %112 {strides = array<i32>} : memref<144x256xf32, #tpu.memory_space<vmem>>, vector<8x256xf32>,
    %c8_78 = arith.constant 8 : index
    %c0_79 = arith.constant 0 : index
    %114 = vector.load %arg5[%c8_78, %c0_79] : memref<144x256xf32, #tpu.memory_space<vmem>>, vector<8x256xf32>
    tpu.vector_store %arg5[%c8_78, %c0_79], %111 {strides = array<i32>} : memref<144x256xf32, #tpu.memory_space<vmem>>, vector<8x256xf32>,
    %c240_i32_80 = arith.constant 240 : i32
    %115 = tpu.dynamic_rotate %111 by %c240_i32_80 dim 1 : vector<8x256xf32>, i32 -> vector<8x256xf32>
    %c16_81 = arith.constant 16 : index
    %c0_82 = arith.constant 0 : index
    %116 = vector.load %arg5[%c16_81, %c0_82] : memref<144x256xf32, #tpu.memory_space<vmem>>, vector<8x256xf32>
    tpu.vector_store %arg5[%c16_81, %c0_82], %115 {strides = array<i32>} : memref<144x256xf32, #tpu.memory_space<vmem>>, vector<8x256xf32>,
    %c16_i32_83 = arith.constant 16 : i32
    %117 = tpu.dynamic_rotate %106 by %c16_i32_83 dim 1 : vector<8x256xf32>, i32 -> vector<8x256xf32>
    %c24_84 = arith.constant 24 : index
    %c0_85 = arith.constant 0 : index
    %118 = vector.load %arg5[%c24_84, %c0_85] : memref<144x256xf32, #tpu.memory_space<vmem>>, vector<8x256xf32>
    tpu.vector_store %arg5[%c24_84, %c0_85], %117 {strides = array<i32>} : memref<144x256xf32, #tpu.memory_space<vmem>>, vector<8x256xf32>,
    %c32_86 = arith.constant 32 : index
    %c0_87 = arith.constant 0 : index
    %119 = vector.load %arg5[%c32_86, %c0_87] : memref<144x256xf32, #tpu.memory_space<vmem>>, vector<8x256xf32>
    tpu.vector_store %arg5[%c32_86, %c0_87], %106 {strides = array<i32>} : memref<144x256xf32, #tpu.memory_space<vmem>>, vector<8x256xf32>,
    %c240_i32_88 = arith.constant 240 : i32
    %120 = tpu.dynamic_rotate %106 by %c240_i32_88 dim 1 : vector<8x256xf32>, i32 -> vector<8x256xf32>
    %c40_89 = arith.constant 40 : index
    %c0_90 = arith.constant 0 : index
    %121 = vector.load %arg5[%c40_89, %c0_90] : memref<144x256xf32, #tpu.memory_space<vmem>>, vector<8x256xf32>
    tpu.vector_store %arg5[%c40_89, %c0_90], %120 {strides = array<i32>} : memref<144x256xf32, #tpu.memory_space<vmem>>, vector<8x256xf32>,
    %c255_i32_91 = arith.constant 255 : i32
    %122 = tpu.dynamic_rotate %106 by %c255_i32_91 dim 1 : vector<8x256xf32>, i32 -> vector<8x256xf32>
    %c15_i32_92 = arith.constant 15 : i32
    %123 = tpu.dynamic_rotate %106 by %c15_i32_92 dim 1 : vector<8x256xf32>, i32 -> vector<8x256xf32>
    %124 = vector.shape_cast %20 : vector<1x256xi1> to vector<1x256xi1>
    %125 = vector.broadcast %124 : vector<1x256xi1> to vector<8x256xi1>
    %126 = arith.select %125, %123, %122 : vector<8x256xi1>, vector<8x256xf32>
    %c16_i32_93 = arith.constant 16 : i32
    %127 = tpu.dynamic_rotate %126 by %c16_i32_93 dim 1 : vector<8x256xf32>, i32 -> vector<8x256xf32>
    %c48_94 = arith.constant 48 : index
    %c0_95 = arith.constant 0 : index
    %128 = vector.load %arg5[%c48_94, %c0_95] : memref<144x256xf32, #tpu.memory_space<vmem>>, vector<8x256xf32>
    tpu.vector_store %arg5[%c48_94, %c0_95], %127 {strides = array<i32>} : memref<144x256xf32, #tpu.memory_space<vmem>>, vector<8x256xf32>,
    %c56_96 = arith.constant 56 : index
    %c0_97 = arith.constant 0 : index
    %129 = vector.load %arg5[%c56_96, %c0_97] : memref<144x256xf32, #tpu.memory_space<vmem>>, vector<8x256xf32>
    tpu.vector_store %arg5[%c56_96, %c0_97], %126 {strides = array<i32>} : memref<144x256xf32, #tpu.memory_space<vmem>>, vector<8x256xf32>,
    %c240_i32_98 = arith.constant 240 : i32
    %130 = tpu.dynamic_rotate %126 by %c240_i32_98 dim 1 : vector<8x256xf32>, i32 -> vector<8x256xf32>
    %c64_99 = arith.constant 64 : index
    %c0_100 = arith.constant 0 : index
    %131 = vector.load %arg5[%c64_99, %c0_100] : memref<144x256xf32, #tpu.memory_space<vmem>>, vector<8x256xf32>
    tpu.vector_store %arg5[%c64_99, %c0_100], %130 {strides = array<i32>} : memref<144x256xf32, #tpu.memory_space<vmem>>, vector<8x256xf32>,
    %c0_101 = arith.constant 0 : index
    %c0_102 = arith.constant 0 : index
    %132 = vector.load %arg5[%c0_101, %c0_102] : memref<144x256xf32, #tpu.memory_space<vmem>>, vector<72x256xf32>
    %cst_103 = arith.constant dense<0.000000e+00> : vector<8x256xf32>
    %133 = tpu.matmul %27, %132, %cst_103 {dimension_numbers = #tpu.dot_dimension_numbers<[1], [0], [0], [1], [0, 0, 1, 1], [], []>} : vector<8x72xf32>, vector<72x256xf32>, vector<8x256xf32> -> vector<8x256xf32>
    %134 = arith.addf %133, %31 : vector<8x256xf32>
    %cst_104 = arith.constant 0.000000e+00 : f32
    %135 = vector.broadcast %cst_104 : f32 to vector<8x256xf32>
    %136 = arith.cmpf oge, %134, %135 : vector<8x256xf32>
    %137 = vector.broadcast %23 : f32 to vector<8x256xf32>
    %138 = arith.mulf %137, %134 : vector<8x256xf32>
    %139 = arith.select %136, %134, %138 : vector<8x256xi1>, vector<8x256xf32>
    %c1_i32_105 = arith.constant 1 : i32
    %140 = tpu.dynamic_rotate %139 by %c1_i32_105 dim 1 : vector<8x256xf32>, i32 -> vector<8x256xf32>
    %c241_i32_106 = arith.constant 241 : i32
    %141 = tpu.dynamic_rotate %139 by %c241_i32_106 dim 1 : vector<8x256xf32>, i32 -> vector<8x256xf32>
    %142 = vector.shape_cast %18 : vector<1x256xi1> to vector<1x256xi1>
    %143 = vector.broadcast %142 : vector<1x256xi1> to vector<8x256xi1>
    %144 = arith.select %143, %141, %140 : vector<8x256xi1>, vector<8x256xf32>
    %c16_i32_107 = arith.constant 16 : i32
    %145 = tpu.dynamic_rotate %144 by %c16_i32_107 dim 1 : vector<8x256xf32>, i32 -> vector<8x256xf32>
    %c0_108 = arith.constant 0 : index
    %c0_109 = arith.constant 0 : index
    %146 = vector.load %arg5[%c0_108, %c0_109] : memref<144x256xf32, #tpu.memory_space<vmem>>, vector<8x256xf32>
    tpu.vector_store %arg5[%c0_108, %c0_109], %145 {strides = array<i32>} : memref<144x256xf32, #tpu.memory_space<vmem>>, vector<8x256xf32>,
    %c8_110 = arith.constant 8 : index
    %c0_111 = arith.constant 0 : index
    %147 = vector.load %arg5[%c8_110, %c0_111] : memref<144x256xf32, #tpu.memory_space<vmem>>, vector<8x256xf32>
    tpu.vector_store %arg5[%c8_110, %c0_111], %144 {strides = array<i32>} : memref<144x256xf32, #tpu.memory_space<vmem>>, vector<8x256xf32>,
    %c240_i32_112 = arith.constant 240 : i32
    %148 = tpu.dynamic_rotate %144 by %c240_i32_112 dim 1 : vector<8x256xf32>, i32 -> vector<8x256xf32>
    %c16_113 = arith.constant 16 : index
    %c0_114 = arith.constant 0 : index
    %149 = vector.load %arg5[%c16_113, %c0_114] : memref<144x256xf32, #tpu.memory_space<vmem>>, vector<8x256xf32>
    tpu.vector_store %arg5[%c16_113, %c0_114], %148 {strides = array<i32>} : memref<144x256xf32, #tpu.memory_space<vmem>>, vector<8x256xf32>,
    %c16_i32_115 = arith.constant 16 : i32
    %150 = tpu.dynamic_rotate %139 by %c16_i32_115 dim 1 : vector<8x256xf32>, i32 -> vector<8x256xf32>
    %c24_116 = arith.constant 24 : index
    %c0_117 = arith.constant 0 : index
    %151 = vector.load %arg5[%c24_116, %c0_117] : memref<144x256xf32, #tpu.memory_space<vmem>>, vector<8x256xf32>
    tpu.vector_store %arg5[%c24_116, %c0_117], %150 {strides = array<i32>} : memref<144x256xf32, #tpu.memory_space<vmem>>, vector<8x256xf32>,
    %c32_118 = arith.constant 32 : index
    %c0_119 = arith.constant 0 : index
    %152 = vector.load %arg5[%c32_118, %c0_119] : memref<144x256xf32, #tpu.memory_space<vmem>>, vector<8x256xf32>
    tpu.vector_store %arg5[%c32_118, %c0_119], %139 {strides = array<i32>} : memref<144x256xf32, #tpu.memory_space<vmem>>, vector<8x256xf32>,
    %c240_i32_120 = arith.constant 240 : i32
    %153 = tpu.dynamic_rotate %139 by %c240_i32_120 dim 1 : vector<8x256xf32>, i32 -> vector<8x256xf32>
    %c40_121 = arith.constant 40 : index
    %c0_122 = arith.constant 0 : index
    %154 = vector.load %arg5[%c40_121, %c0_122] : memref<144x256xf32, #tpu.memory_space<vmem>>, vector<8x256xf32>
    tpu.vector_store %arg5[%c40_121, %c0_122], %153 {strides = array<i32>} : memref<144x256xf32, #tpu.memory_space<vmem>>, vector<8x256xf32>,
    %c255_i32_123 = arith.constant 255 : i32
    %155 = tpu.dynamic_rotate %139 by %c255_i32_123 dim 1 : vector<8x256xf32>, i32 -> vector<8x256xf32>
    %c15_i32_124 = arith.constant 15 : i32
    %156 = tpu.dynamic_rotate %139 by %c15_i32_124 dim 1 : vector<8x256xf32>, i32 -> vector<8x256xf32>
    %157 = vector.shape_cast %20 : vector<1x256xi1> to vector<1x256xi1>
    %158 = vector.broadcast %157 : vector<1x256xi1> to vector<8x256xi1>
    %159 = arith.select %158, %156, %155 : vector<8x256xi1>, vector<8x256xf32>
    %c16_i32_125 = arith.constant 16 : i32
    %160 = tpu.dynamic_rotate %159 by %c16_i32_125 dim 1 : vector<8x256xf32>, i32 -> vector<8x256xf32>
    %c48_126 = arith.constant 48 : index
    %c0_127 = arith.constant 0 : index
    %161 = vector.load %arg5[%c48_126, %c0_127] : memref<144x256xf32, #tpu.memory_space<vmem>>, vector<8x256xf32>
    tpu.vector_store %arg5[%c48_126, %c0_127], %160 {strides = array<i32>} : memref<144x256xf32, #tpu.memory_space<vmem>>, vector<8x256xf32>,
    %c56_128 = arith.constant 56 : index
    %c0_129 = arith.constant 0 : index
    %162 = vector.load %arg5[%c56_128, %c0_129] : memref<144x256xf32, #tpu.memory_space<vmem>>, vector<8x256xf32>
    tpu.vector_store %arg5[%c56_128, %c0_129], %159 {strides = array<i32>} : memref<144x256xf32, #tpu.memory_space<vmem>>, vector<8x256xf32>,
    %c240_i32_130 = arith.constant 240 : i32
    %163 = tpu.dynamic_rotate %159 by %c240_i32_130 dim 1 : vector<8x256xf32>, i32 -> vector<8x256xf32>
    %c64_131 = arith.constant 64 : index
    %c0_132 = arith.constant 0 : index
    %164 = vector.load %arg5[%c64_131, %c0_132] : memref<144x256xf32, #tpu.memory_space<vmem>>, vector<8x256xf32>
    tpu.vector_store %arg5[%c64_131, %c0_132], %163 {strides = array<i32>} : memref<144x256xf32, #tpu.memory_space<vmem>>, vector<8x256xf32>,
    %c0_133 = arith.constant 0 : index
    %c0_134 = arith.constant 0 : index
    %165 = vector.load %arg5[%c0_133, %c0_134] : memref<144x256xf32, #tpu.memory_space<vmem>>, vector<72x256xf32>
    %cst_135 = arith.constant dense<0.000000e+00> : vector<8x256xf32>
    %166 = tpu.matmul %28, %165, %cst_135 {dimension_numbers = #tpu.dot_dimension_numbers<[1], [0], [0], [1], [0, 0, 1, 1], [], []>} : vector<8x72xf32>, vector<72x256xf32>, vector<8x256xf32> -> vector<8x256xf32>
    %167 = vector.extract_strided_slice %166 {offsets = [0, 0], sizes = [1, 256], strides = [1, 1]} : vector<8x256xf32> to vector<1x256xf32>
    %168 = vector.broadcast %24 : f32 to vector<1x256xf32>
    %169 = arith.addf %167, %168 : vector<1x256xf32>
    %170 = arith.negf %169 : vector<1x256xf32>
    %171 = math.exp %170 : vector<1x256xf32>
    %cst_136 = arith.constant 1.000000e+00 : f32
    %172 = vector.broadcast %cst_136 : f32 to vector<1x256xf32>
    %173 = arith.addf %172, %171 : vector<1x256xf32>
    %174 = arith.divf %172, %173 : vector<1x256xf32>
    %c0_137 = arith.constant 0 : index
    %c0_138 = arith.constant 0 : index
    %c0_139 = arith.constant 0 : index
    %175 = vector.load %arg4[%c0_137, %c0_138, %c0_139] : memref<2x1x256xf32, #tpu.memory_space<vmem>>, vector<1x1x256xf32>
    %176 = vector.shape_cast %175 : vector<1x1x256xf32> to vector<1x256xf32>
    %177 = vector.shape_cast %174 : vector<1x256xf32> to vector<1x1x256xf32>
    tpu.vector_store %arg4[%c0_137, %c0_138, %c0_139], %177 {strides = array<i32>} : memref<2x1x256xf32, #tpu.memory_space<vmem>>, vector<1x1x256xf32>,
    %c1_140 = arith.constant 1 : index
    %c0_141 = arith.constant 0 : index
    %c0_142 = arith.constant 0 : index
    %178 = vector.load %arg1[%c1_140, %c0_141, %c0_142] : memref<2x1x256xf32, #tpu.memory_space<vmem>>, vector<1x1x256xf32>
    %179 = vector.shape_cast %178 : vector<1x1x256xf32> to vector<1x256xf32>
    %180 = vector.broadcast %179 : vector<1x256xf32> to vector<8x256xf32>
    %181 = arith.mulf %32, %180 : vector<8x256xf32>
    %182 = arith.addf %181, %33 : vector<8x256xf32>
    %cst_143 = arith.constant 0.000000e+00 : f32
    %183 = vector.broadcast %cst_143 : f32 to vector<8x256xf32>
    %184 = arith.maximumf %182, %183 : vector<8x256xf32>
    %c1_i32_144 = arith.constant 1 : i32
    %185 = tpu.dynamic_rotate %184 by %c1_i32_144 dim 1 : vector<8x256xf32>, i32 -> vector<8x256xf32>
    %c241_i32_145 = arith.constant 241 : i32
    %186 = tpu.dynamic_rotate %184 by %c241_i32_145 dim 1 : vector<8x256xf32>, i32 -> vector<8x256xf32>
    %187 = vector.shape_cast %18 : vector<1x256xi1> to vector<1x256xi1>
    %188 = vector.broadcast %187 : vector<1x256xi1> to vector<8x256xi1>
    %189 = arith.select %188, %186, %185 : vector<8x256xi1>, vector<8x256xf32>
    %c16_i32_146 = arith.constant 16 : i32
    %190 = tpu.dynamic_rotate %189 by %c16_i32_146 dim 1 : vector<8x256xf32>, i32 -> vector<8x256xf32>
    %c0_147 = arith.constant 0 : index
    %c0_148 = arith.constant 0 : index
    %191 = vector.load %arg5[%c0_147, %c0_148] : memref<144x256xf32, #tpu.memory_space<vmem>>, vector<8x256xf32>
    tpu.vector_store %arg5[%c0_147, %c0_148], %190 {strides = array<i32>} : memref<144x256xf32, #tpu.memory_space<vmem>>, vector<8x256xf32>,
    %c8_149 = arith.constant 8 : index
    %c0_150 = arith.constant 0 : index
    %192 = vector.load %arg5[%c8_149, %c0_150] : memref<144x256xf32, #tpu.memory_space<vmem>>, vector<8x256xf32>
    tpu.vector_store %arg5[%c8_149, %c0_150], %189 {strides = array<i32>} : memref<144x256xf32, #tpu.memory_space<vmem>>, vector<8x256xf32>,
    %c240_i32_151 = arith.constant 240 : i32
    %193 = tpu.dynamic_rotate %189 by %c240_i32_151 dim 1 : vector<8x256xf32>, i32 -> vector<8x256xf32>
    %c16_152 = arith.constant 16 : index
    %c0_153 = arith.constant 0 : index
    %194 = vector.load %arg5[%c16_152, %c0_153] : memref<144x256xf32, #tpu.memory_space<vmem>>, vector<8x256xf32>
    tpu.vector_store %arg5[%c16_152, %c0_153], %193 {strides = array<i32>} : memref<144x256xf32, #tpu.memory_space<vmem>>, vector<8x256xf32>,
    %c16_i32_154 = arith.constant 16 : i32
    %195 = tpu.dynamic_rotate %184 by %c16_i32_154 dim 1 : vector<8x256xf32>, i32 -> vector<8x256xf32>
    %c24_155 = arith.constant 24 : index
    %c0_156 = arith.constant 0 : index
    %196 = vector.load %arg5[%c24_155, %c0_156] : memref<144x256xf32, #tpu.memory_space<vmem>>, vector<8x256xf32>
    tpu.vector_store %arg5[%c24_155, %c0_156], %195 {strides = array<i32>} : memref<144x256xf32, #tpu.memory_space<vmem>>, vector<8x256xf32>,
    %c32_157 = arith.constant 32 : index
    %c0_158 = arith.constant 0 : index
    %197 = vector.load %arg5[%c32_157, %c0_158] : memref<144x256xf32, #tpu.memory_space<vmem>>, vector<8x256xf32>
    tpu.vector_store %arg5[%c32_157, %c0_158], %184 {strides = array<i32>} : memref<144x256xf32, #tpu.memory_space<vmem>>, vector<8x256xf32>,
    %c240_i32_159 = arith.constant 240 : i32
    %198 = tpu.dynamic_rotate %184 by %c240_i32_159 dim 1 : vector<8x256xf32>, i32 -> vector<8x256xf32>
    %c40_160 = arith.constant 40 : index
    %c0_161 = arith.constant 0 : index
    %199 = vector.load %arg5[%c40_160, %c0_161] : memref<144x256xf32, #tpu.memory_space<vmem>>, vector<8x256xf32>
    tpu.vector_store %arg5[%c40_160, %c0_161], %198 {strides = array<i32>} : memref<144x256xf32, #tpu.memory_space<vmem>>, vector<8x256xf32>,
    %c255_i32_162 = arith.constant 255 : i32
    %200 = tpu.dynamic_rotate %184 by %c255_i32_162 dim 1 : vector<8x256xf32>, i32 -> vector<8x256xf32>
    %c15_i32_163 = arith.constant 15 : i32
    %201 = tpu.dynamic_rotate %184 by %c15_i32_163 dim 1 : vector<8x256xf32>, i32 -> vector<8x256xf32>
    %202 = vector.shape_cast %20 : vector<1x256xi1> to vector<1x256xi1>
    %203 = vector.broadcast %202 : vector<1x256xi1> to vector<8x256xi1>
    %204 = arith.select %203, %201, %200 : vector<8x256xi1>, vector<8x256xf32>
    %c16_i32_164 = arith.constant 16 : i32
    %205 = tpu.dynamic_rotate %204 by %c16_i32_164 dim 1 : vector<8x256xf32>, i32 -> vector<8x256xf32>
    %c48_165 = arith.constant 48 : index
    %c0_166 = arith.constant 0 : index
    %206 = vector.load %arg5[%c48_165, %c0_166] : memref<144x256xf32, #tpu.memory_space<vmem>>, vector<8x256xf32>
    tpu.vector_store %arg5[%c48_165, %c0_166], %205 {strides = array<i32>} : memref<144x256xf32, #tpu.memory_space<vmem>>, vector<8x256xf32>,
    %c56_167 = arith.constant 56 : index
    %c0_168 = arith.constant 0 : index
    %207 = vector.load %arg5[%c56_167, %c0_168] : memref<144x256xf32, #tpu.memory_space<vmem>>, vector<8x256xf32>
    tpu.vector_store %arg5[%c56_167, %c0_168], %204 {strides = array<i32>} : memref<144x256xf32, #tpu.memory_space<vmem>>, vector<8x256xf32>,
    %c240_i32_169 = arith.constant 240 : i32
    %208 = tpu.dynamic_rotate %204 by %c240_i32_169 dim 1 : vector<8x256xf32>, i32 -> vector<8x256xf32>
    %c64_170 = arith.constant 64 : index
    %c0_171 = arith.constant 0 : index
    %209 = vector.load %arg5[%c64_170, %c0_171] : memref<144x256xf32, #tpu.memory_space<vmem>>, vector<8x256xf32>
    tpu.vector_store %arg5[%c64_170, %c0_171], %208 {strides = array<i32>} : memref<144x256xf32, #tpu.memory_space<vmem>>, vector<8x256xf32>,
    %c0_172 = arith.constant 0 : index
    %c0_173 = arith.constant 0 : index
    %210 = vector.load %arg5[%c0_172, %c0_173] : memref<144x256xf32, #tpu.memory_space<vmem>>, vector<72x256xf32>
    %cst_174 = arith.constant dense<0.000000e+00> : vector<16x256xf32>
    %211 = tpu.matmul %25, %210, %cst_174 {dimension_numbers = #tpu.dot_dimension_numbers<[1], [0], [0], [1], [0, 0, 1, 1], [], []>} : vector<16x72xf32>, vector<72x256xf32>, vector<16x256xf32> -> vector<16x256xf32>
    %212 = arith.addf %211, %29 : vector<16x256xf32>
    %cst_175 = arith.constant 0.000000e+00 : f32
    %213 = vector.broadcast %cst_175 : f32 to vector<16x256xf32>
    %214 = arith.cmpf oge, %212, %213 : vector<16x256xf32>
    %215 = vector.broadcast %21 : f32 to vector<16x256xf32>
    %216 = arith.mulf %215, %212 : vector<16x256xf32>
    %217 = arith.select %214, %212, %216 : vector<16x256xi1>, vector<16x256xf32>
    %c1_i32_176 = arith.constant 1 : i32
    %218 = tpu.dynamic_rotate %217 by %c1_i32_176 dim 1 : vector<16x256xf32>, i32 -> vector<16x256xf32>
    %c241_i32_177 = arith.constant 241 : i32
    %219 = tpu.dynamic_rotate %217 by %c241_i32_177 dim 1 : vector<16x256xf32>, i32 -> vector<16x256xf32>
    %220 = vector.shape_cast %18 : vector<1x256xi1> to vector<1x256xi1>
    %221 = vector.broadcast %220 : vector<1x256xi1> to vector<16x256xi1>
    %222 = arith.select %221, %219, %218 : vector<16x256xi1>, vector<16x256xf32>
    %c16_i32_178 = arith.constant 16 : i32
    %223 = tpu.dynamic_rotate %222 by %c16_i32_178 dim 1 : vector<16x256xf32>, i32 -> vector<16x256xf32>
    %c0_179 = arith.constant 0 : index
    %c0_180 = arith.constant 0 : index
    %224 = vector.load %arg5[%c0_179, %c0_180] : memref<144x256xf32, #tpu.memory_space<vmem>>, vector<16x256xf32>
    tpu.vector_store %arg5[%c0_179, %c0_180], %223 {strides = array<i32>} : memref<144x256xf32, #tpu.memory_space<vmem>>, vector<16x256xf32>,
    %c16_181 = arith.constant 16 : index
    %c0_182 = arith.constant 0 : index
    %225 = vector.load %arg5[%c16_181, %c0_182] : memref<144x256xf32, #tpu.memory_space<vmem>>, vector<16x256xf32>
    tpu.vector_store %arg5[%c16_181, %c0_182], %222 {strides = array<i32>} : memref<144x256xf32, #tpu.memory_space<vmem>>, vector<16x256xf32>,
    %c240_i32_183 = arith.constant 240 : i32
    %226 = tpu.dynamic_rotate %222 by %c240_i32_183 dim 1 : vector<16x256xf32>, i32 -> vector<16x256xf32>
    %c32_184 = arith.constant 32 : index
    %c0_185 = arith.constant 0 : index
    %227 = vector.load %arg5[%c32_184, %c0_185] : memref<144x256xf32, #tpu.memory_space<vmem>>, vector<16x256xf32>
    tpu.vector_store %arg5[%c32_184, %c0_185], %226 {strides = array<i32>} : memref<144x256xf32, #tpu.memory_space<vmem>>, vector<16x256xf32>,
    %c16_i32_186 = arith.constant 16 : i32
    %228 = tpu.dynamic_rotate %217 by %c16_i32_186 dim 1 : vector<16x256xf32>, i32 -> vector<16x256xf32>
    %c48_187 = arith.constant 48 : index
    %c0_188 = arith.constant 0 : index
    %229 = vector.load %arg5[%c48_187, %c0_188] : memref<144x256xf32, #tpu.memory_space<vmem>>, vector<16x256xf32>
    tpu.vector_store %arg5[%c48_187, %c0_188], %228 {strides = array<i32>} : memref<144x256xf32, #tpu.memory_space<vmem>>, vector<16x256xf32>,
    %c64_189 = arith.constant 64 : index
    %c0_190 = arith.constant 0 : index
    %230 = vector.load %arg5[%c64_189, %c0_190] : memref<144x256xf32, #tpu.memory_space<vmem>>, vector<16x256xf32>
    tpu.vector_store %arg5[%c64_189, %c0_190], %217 {strides = array<i32>} : memref<144x256xf32, #tpu.memory_space<vmem>>, vector<16x256xf32>,
    %c240_i32_191 = arith.constant 240 : i32
    %231 = tpu.dynamic_rotate %217 by %c240_i32_191 dim 1 : vector<16x256xf32>, i32 -> vector<16x256xf32>
    %c80_192 = arith.constant 80 : index
    %c0_193 = arith.constant 0 : index
    %232 = vector.load %arg5[%c80_192, %c0_193] : memref<144x256xf32, #tpu.memory_space<vmem>>, vector<16x256xf32>
    tpu.vector_store %arg5[%c80_192, %c0_193], %231 {strides = array<i32>} : memref<144x256xf32, #tpu.memory_space<vmem>>, vector<16x256xf32>,
    %c255_i32_194 = arith.constant 255 : i32
    %233 = tpu.dynamic_rotate %217 by %c255_i32_194 dim 1 : vector<16x256xf32>, i32 -> vector<16x256xf32>
    %c15_i32_195 = arith.constant 15 : i32
    %234 = tpu.dynamic_rotate %217 by %c15_i32_195 dim 1 : vector<16x256xf32>, i32 -> vector<16x256xf32>
    %235 = vector.shape_cast %20 : vector<1x256xi1> to vector<1x256xi1>
    %236 = vector.broadcast %235 : vector<1x256xi1> to vector<16x256xi1>
    %237 = arith.select %236, %234, %233 : vector<16x256xi1>, vector<16x256xf32>
    %c16_i32_196 = arith.constant 16 : i32
    %238 = tpu.dynamic_rotate %237 by %c16_i32_196 dim 1 : vector<16x256xf32>, i32 -> vector<16x256xf32>
    %c96_197 = arith.constant 96 : index
    %c0_198 = arith.constant 0 : index
    %239 = vector.load %arg5[%c96_197, %c0_198] : memref<144x256xf32, #tpu.memory_space<vmem>>, vector<16x256xf32>
    tpu.vector_store %arg5[%c96_197, %c0_198], %238 {strides = array<i32>} : memref<144x256xf32, #tpu.memory_space<vmem>>, vector<16x256xf32>,
    %c112_199 = arith.constant 112 : index
    %c0_200 = arith.constant 0 : index
    %240 = vector.load %arg5[%c112_199, %c0_200] : memref<144x256xf32, #tpu.memory_space<vmem>>, vector<16x256xf32>
    tpu.vector_store %arg5[%c112_199, %c0_200], %237 {strides = array<i32>} : memref<144x256xf32, #tpu.memory_space<vmem>>, vector<16x256xf32>,
    %c240_i32_201 = arith.constant 240 : i32
    %241 = tpu.dynamic_rotate %237 by %c240_i32_201 dim 1 : vector<16x256xf32>, i32 -> vector<16x256xf32>
    %c128_202 = arith.constant 128 : index
    %c0_203 = arith.constant 0 : index
    %242 = vector.load %arg5[%c128_202, %c0_203] : memref<144x256xf32, #tpu.memory_space<vmem>>, vector<16x256xf32>
    tpu.vector_store %arg5[%c128_202, %c0_203], %241 {strides = array<i32>} : memref<144x256xf32, #tpu.memory_space<vmem>>, vector<16x256xf32>,
    %c0_204 = arith.constant 0 : index
    %c0_205 = arith.constant 0 : index
    %243 = vector.load %arg5[%c0_204, %c0_205] : memref<144x256xf32, #tpu.memory_space<vmem>>, vector<144x256xf32>
    %cst_206 = arith.constant dense<0.000000e+00> : vector<8x256xf32>
    %244 = tpu.matmul %26, %243, %cst_206 {dimension_numbers = #tpu.dot_dimension_numbers<[1], [0], [0], [1], [0, 0, 1, 1], [], []>} : vector<8x144xf32>, vector<144x256xf32>, vector<8x256xf32> -> vector<8x256xf32>
    %245 = arith.addf %244, %30 : vector<8x256xf32>
    %cst_207 = arith.constant 0.000000e+00 : f32
    %246 = vector.broadcast %cst_207 : f32 to vector<8x256xf32>
    %247 = arith.cmpf oge, %245, %246 : vector<8x256xf32>
    %248 = vector.broadcast %22 : f32 to vector<8x256xf32>
    %249 = arith.mulf %248, %245 : vector<8x256xf32>
    %250 = arith.select %247, %245, %249 : vector<8x256xi1>, vector<8x256xf32>
    %c1_i32_208 = arith.constant 1 : i32
    %251 = tpu.dynamic_rotate %250 by %c1_i32_208 dim 1 : vector<8x256xf32>, i32 -> vector<8x256xf32>
    %c241_i32_209 = arith.constant 241 : i32
    %252 = tpu.dynamic_rotate %250 by %c241_i32_209 dim 1 : vector<8x256xf32>, i32 -> vector<8x256xf32>
    %253 = vector.shape_cast %18 : vector<1x256xi1> to vector<1x256xi1>
    %254 = vector.broadcast %253 : vector<1x256xi1> to vector<8x256xi1>
    %255 = arith.select %254, %252, %251 : vector<8x256xi1>, vector<8x256xf32>
    %c16_i32_210 = arith.constant 16 : i32
    %256 = tpu.dynamic_rotate %255 by %c16_i32_210 dim 1 : vector<8x256xf32>, i32 -> vector<8x256xf32>
    %c0_211 = arith.constant 0 : index
    %c0_212 = arith.constant 0 : index
    %257 = vector.load %arg5[%c0_211, %c0_212] : memref<144x256xf32, #tpu.memory_space<vmem>>, vector<8x256xf32>
    tpu.vector_store %arg5[%c0_211, %c0_212], %256 {strides = array<i32>} : memref<144x256xf32, #tpu.memory_space<vmem>>, vector<8x256xf32>,
    %c8_213 = arith.constant 8 : index
    %c0_214 = arith.constant 0 : index
    %258 = vector.load %arg5[%c8_213, %c0_214] : memref<144x256xf32, #tpu.memory_space<vmem>>, vector<8x256xf32>
    tpu.vector_store %arg5[%c8_213, %c0_214], %255 {strides = array<i32>} : memref<144x256xf32, #tpu.memory_space<vmem>>, vector<8x256xf32>,
    %c240_i32_215 = arith.constant 240 : i32
    %259 = tpu.dynamic_rotate %255 by %c240_i32_215 dim 1 : vector<8x256xf32>, i32 -> vector<8x256xf32>
    %c16_216 = arith.constant 16 : index
    %c0_217 = arith.constant 0 : index
    %260 = vector.load %arg5[%c16_216, %c0_217] : memref<144x256xf32, #tpu.memory_space<vmem>>, vector<8x256xf32>
    tpu.vector_store %arg5[%c16_216, %c0_217], %259 {strides = array<i32>} : memref<144x256xf32, #tpu.memory_space<vmem>>, vector<8x256xf32>,
    %c16_i32_218 = arith.constant 16 : i32
    %261 = tpu.dynamic_rotate %250 by %c16_i32_218 dim 1 : vector<8x256xf32>, i32 -> vector<8x256xf32>
    %c24_219 = arith.constant 24 : index
    %c0_220 = arith.constant 0 : index
    %262 = vector.load %arg5[%c24_219, %c0_220] : memref<144x256xf32, #tpu.memory_space<vmem>>, vector<8x256xf32>
    tpu.vector_store %arg5[%c24_219, %c0_220], %261 {strides = array<i32>} : memref<144x256xf32, #tpu.memory_space<vmem>>, vector<8x256xf32>,
    %c32_221 = arith.constant 32 : index
    %c0_222 = arith.constant 0 : index
    %263 = vector.load %arg5[%c32_221, %c0_222] : memref<144x256xf32, #tpu.memory_space<vmem>>, vector<8x256xf32>
    tpu.vector_store %arg5[%c32_221, %c0_222], %250 {strides = array<i32>} : memref<144x256xf32, #tpu.memory_space<vmem>>, vector<8x256xf32>,
    %c240_i32_223 = arith.constant 240 : i32
    %264 = tpu.dynamic_rotate %250 by %c240_i32_223 dim 1 : vector<8x256xf32>, i32 -> vector<8x256xf32>
    %c40_224 = arith.constant 40 : index
    %c0_225 = arith.constant 0 : index
    %265 = vector.load %arg5[%c40_224, %c0_225] : memref<144x256xf32, #tpu.memory_space<vmem>>, vector<8x256xf32>
    tpu.vector_store %arg5[%c40_224, %c0_225], %264 {strides = array<i32>} : memref<144x256xf32, #tpu.memory_space<vmem>>, vector<8x256xf32>,
    %c255_i32_226 = arith.constant 255 : i32
    %266 = tpu.dynamic_rotate %250 by %c255_i32_226 dim 1 : vector<8x256xf32>, i32 -> vector<8x256xf32>
    %c15_i32_227 = arith.constant 15 : i32
    %267 = tpu.dynamic_rotate %250 by %c15_i32_227 dim 1 : vector<8x256xf32>, i32 -> vector<8x256xf32>
    %268 = vector.shape_cast %20 : vector<1x256xi1> to vector<1x256xi1>
    %269 = vector.broadcast %268 : vector<1x256xi1> to vector<8x256xi1>
    %270 = arith.select %269, %267, %266 : vector<8x256xi1>, vector<8x256xf32>
    %c16_i32_228 = arith.constant 16 : i32
    %271 = tpu.dynamic_rotate %270 by %c16_i32_228 dim 1 : vector<8x256xf32>, i32 -> vector<8x256xf32>
    %c48_229 = arith.constant 48 : index
    %c0_230 = arith.constant 0 : index
    %272 = vector.load %arg5[%c48_229, %c0_230] : memref<144x256xf32, #tpu.memory_space<vmem>>, vector<8x256xf32>
    tpu.vector_store %arg5[%c48_229, %c0_230], %271 {strides = array<i32>} : memref<144x256xf32, #tpu.memory_space<vmem>>, vector<8x256xf32>,
    %c56_231 = arith.constant 56 : index
    %c0_232 = arith.constant 0 : index
    %273 = vector.load %arg5[%c56_231, %c0_232] : memref<144x256xf32, #tpu.memory_space<vmem>>, vector<8x256xf32>
    tpu.vector_store %arg5[%c56_231, %c0_232], %270 {strides = array<i32>} : memref<144x256xf32, #tpu.memory_space<vmem>>, vector<8x256xf32>,
    %c240_i32_233 = arith.constant 240 : i32
    %274 = tpu.dynamic_rotate %270 by %c240_i32_233 dim 1 : vector<8x256xf32>, i32 -> vector<8x256xf32>
    %c64_234 = arith.constant 64 : index
    %c0_235 = arith.constant 0 : index
    %275 = vector.load %arg5[%c64_234, %c0_235] : memref<144x256xf32, #tpu.memory_space<vmem>>, vector<8x256xf32>
    tpu.vector_store %arg5[%c64_234, %c0_235], %274 {strides = array<i32>} : memref<144x256xf32, #tpu.memory_space<vmem>>, vector<8x256xf32>,
    %c0_236 = arith.constant 0 : index
    %c0_237 = arith.constant 0 : index
    %276 = vector.load %arg5[%c0_236, %c0_237] : memref<144x256xf32, #tpu.memory_space<vmem>>, vector<72x256xf32>
    %cst_238 = arith.constant dense<0.000000e+00> : vector<8x256xf32>
    %277 = tpu.matmul %27, %276, %cst_238 {dimension_numbers = #tpu.dot_dimension_numbers<[1], [0], [0], [1], [0, 0, 1, 1], [], []>} : vector<8x72xf32>, vector<72x256xf32>, vector<8x256xf32> -> vector<8x256xf32>
    %278 = arith.addf %277, %31 : vector<8x256xf32>
    %cst_239 = arith.constant 0.000000e+00 : f32
    %279 = vector.broadcast %cst_239 : f32 to vector<8x256xf32>
    %280 = arith.cmpf oge, %278, %279 : vector<8x256xf32>
    %281 = vector.broadcast %23 : f32 to vector<8x256xf32>
    %282 = arith.mulf %281, %278 : vector<8x256xf32>
    %283 = arith.select %280, %278, %282 : vector<8x256xi1>, vector<8x256xf32>
    %c1_i32_240 = arith.constant 1 : i32
    %284 = tpu.dynamic_rotate %283 by %c1_i32_240 dim 1 : vector<8x256xf32>, i32 -> vector<8x256xf32>
    %c241_i32_241 = arith.constant 241 : i32
    %285 = tpu.dynamic_rotate %283 by %c241_i32_241 dim 1 : vector<8x256xf32>, i32 -> vector<8x256xf32>
    %286 = vector.shape_cast %18 : vector<1x256xi1> to vector<1x256xi1>
    %287 = vector.broadcast %286 : vector<1x256xi1> to vector<8x256xi1>
    %288 = arith.select %287, %285, %284 : vector<8x256xi1>, vector<8x256xf32>
    %c16_i32_242 = arith.constant 16 : i32
    %289 = tpu.dynamic_rotate %288 by %c16_i32_242 dim 1 : vector<8x256xf32>, i32 -> vector<8x256xf32>
    %c0_243 = arith.constant 0 : index
    %c0_244 = arith.constant 0 : index
    %290 = vector.load %arg5[%c0_243, %c0_244] : memref<144x256xf32, #tpu.memory_space<vmem>>, vector<8x256xf32>
    tpu.vector_store %arg5[%c0_243, %c0_244], %289 {strides = array<i32>} : memref<144x256xf32, #tpu.memory_space<vmem>>, vector<8x256xf32>,
    %c8_245 = arith.constant 8 : index
    %c0_246 = arith.constant 0 : index
    %291 = vector.load %arg5[%c8_245, %c0_246] : memref<144x256xf32, #tpu.memory_space<vmem>>, vector<8x256xf32>
    tpu.vector_store %arg5[%c8_245, %c0_246], %288 {strides = array<i32>} : memref<144x256xf32, #tpu.memory_space<vmem>>, vector<8x256xf32>,
    %c240_i32_247 = arith.constant 240 : i32
    %292 = tpu.dynamic_rotate %288 by %c240_i32_247 dim 1 : vector<8x256xf32>, i32 -> vector<8x256xf32>
    %c16_248 = arith.constant 16 : index
    %c0_249 = arith.constant 0 : index
    %293 = vector.load %arg5[%c16_248, %c0_249] : memref<144x256xf32, #tpu.memory_space<vmem>>, vector<8x256xf32>
    tpu.vector_store %arg5[%c16_248, %c0_249], %292 {strides = array<i32>} : memref<144x256xf32, #tpu.memory_space<vmem>>, vector<8x256xf32>,
    %c16_i32_250 = arith.constant 16 : i32
    %294 = tpu.dynamic_rotate %283 by %c16_i32_250 dim 1 : vector<8x256xf32>, i32 -> vector<8x256xf32>
    %c24_251 = arith.constant 24 : index
    %c0_252 = arith.constant 0 : index
    %295 = vector.load %arg5[%c24_251, %c0_252] : memref<144x256xf32, #tpu.memory_space<vmem>>, vector<8x256xf32>
    tpu.vector_store %arg5[%c24_251, %c0_252], %294 {strides = array<i32>} : memref<144x256xf32, #tpu.memory_space<vmem>>, vector<8x256xf32>,
    %c32_253 = arith.constant 32 : index
    %c0_254 = arith.constant 0 : index
    %296 = vector.load %arg5[%c32_253, %c0_254] : memref<144x256xf32, #tpu.memory_space<vmem>>, vector<8x256xf32>
    tpu.vector_store %arg5[%c32_253, %c0_254], %283 {strides = array<i32>} : memref<144x256xf32, #tpu.memory_space<vmem>>, vector<8x256xf32>,
    %c240_i32_255 = arith.constant 240 : i32
    %297 = tpu.dynamic_rotate %283 by %c240_i32_255 dim 1 : vector<8x256xf32>, i32 -> vector<8x256xf32>
    %c40_256 = arith.constant 40 : index
    %c0_257 = arith.constant 0 : index
    %298 = vector.load %arg5[%c40_256, %c0_257] : memref<144x256xf32, #tpu.memory_space<vmem>>, vector<8x256xf32>
    tpu.vector_store %arg5[%c40_256, %c0_257], %297 {strides = array<i32>} : memref<144x256xf32, #tpu.memory_space<vmem>>, vector<8x256xf32>,
    %c255_i32_258 = arith.constant 255 : i32
    %299 = tpu.dynamic_rotate %283 by %c255_i32_258 dim 1 : vector<8x256xf32>, i32 -> vector<8x256xf32>
    %c15_i32_259 = arith.constant 15 : i32
    %300 = tpu.dynamic_rotate %283 by %c15_i32_259 dim 1 : vector<8x256xf32>, i32 -> vector<8x256xf32>
    %301 = vector.shape_cast %20 : vector<1x256xi1> to vector<1x256xi1>
    %302 = vector.broadcast %301 : vector<1x256xi1> to vector<8x256xi1>
    %303 = arith.select %302, %300, %299 : vector<8x256xi1>, vector<8x256xf32>
    %c16_i32_260 = arith.constant 16 : i32
    %304 = tpu.dynamic_rotate %303 by %c16_i32_260 dim 1 : vector<8x256xf32>, i32 -> vector<8x256xf32>
    %c48_261 = arith.constant 48 : index
    %c0_262 = arith.constant 0 : index
    %305 = vector.load %arg5[%c48_261, %c0_262] : memref<144x256xf32, #tpu.memory_space<vmem>>, vector<8x256xf32>
    tpu.vector_store %arg5[%c48_261, %c0_262], %304 {strides = array<i32>} : memref<144x256xf32, #tpu.memory_space<vmem>>, vector<8x256xf32>,
    %c56_263 = arith.constant 56 : index
    %c0_264 = arith.constant 0 : index
    %306 = vector.load %arg5[%c56_263, %c0_264] : memref<144x256xf32, #tpu.memory_space<vmem>>, vector<8x256xf32>
    tpu.vector_store %arg5[%c56_263, %c0_264], %303 {strides = array<i32>} : memref<144x256xf32, #tpu.memory_space<vmem>>, vector<8x256xf32>,
    %c240_i32_265 = arith.constant 240 : i32
    %307 = tpu.dynamic_rotate %303 by %c240_i32_265 dim 1 : vector<8x256xf32>, i32 -> vector<8x256xf32>
    %c64_266 = arith.constant 64 : index
    %c0_267 = arith.constant 0 : index
    %308 = vector.load %arg5[%c64_266, %c0_267] : memref<144x256xf32, #tpu.memory_space<vmem>>, vector<8x256xf32>
    tpu.vector_store %arg5[%c64_266, %c0_267], %307 {strides = array<i32>} : memref<144x256xf32, #tpu.memory_space<vmem>>, vector<8x256xf32>,
    %c0_268 = arith.constant 0 : index
    %c0_269 = arith.constant 0 : index
    %309 = vector.load %arg5[%c0_268, %c0_269] : memref<144x256xf32, #tpu.memory_space<vmem>>, vector<72x256xf32>
    %cst_270 = arith.constant dense<0.000000e+00> : vector<8x256xf32>
    %310 = tpu.matmul %28, %309, %cst_270 {dimension_numbers = #tpu.dot_dimension_numbers<[1], [0], [0], [1], [0, 0, 1, 1], [], []>} : vector<8x72xf32>, vector<72x256xf32>, vector<8x256xf32> -> vector<8x256xf32>
    %311 = vector.extract_strided_slice %310 {offsets = [0, 0], sizes = [1, 256], strides = [1, 1]} : vector<8x256xf32> to vector<1x256xf32>
    %312 = vector.broadcast %24 : f32 to vector<1x256xf32>
    %313 = arith.addf %311, %312 : vector<1x256xf32>
    %314 = arith.negf %313 : vector<1x256xf32>
    %315 = math.exp %314 : vector<1x256xf32>
    %cst_271 = arith.constant 1.000000e+00 : f32
    %316 = vector.broadcast %cst_271 : f32 to vector<1x256xf32>
    %317 = arith.addf %316, %315 : vector<1x256xf32>
    %318 = arith.divf %316, %317 : vector<1x256xf32>
    %c1_272 = arith.constant 1 : index
    %c0_273 = arith.constant 0 : index
    %c0_274 = arith.constant 0 : index
    %319 = vector.load %arg4[%c1_272, %c0_273, %c0_274] : memref<2x1x256xf32, #tpu.memory_space<vmem>>, vector<1x1x256xf32>
    %320 = vector.shape_cast %319 : vector<1x1x256xf32> to vector<1x256xf32>
    %321 = vector.shape_cast %318 : vector<1x256xf32> to vector<1x1x256xf32>
    tpu.vector_store %arg4[%c1_272, %c0_273, %c0_274], %321 {strides = array<i32>} : memref<2x1x256xf32, #tpu.memory_space<vmem>>, vector<1x1x256xf32>,
    return
  }
  func.func @transform_0(%arg0: i32) -> (i32, i32, i32) {
    %c0_i32 = arith.constant 0 : i32
    %c0_i32_0 = arith.constant 0 : i32
    %c0_i32_1 = arith.constant 0 : i32
    return %arg0, %c0_i32, %c0_i32_0 : i32, i32, i32
  }
  func.func @transform_1(%arg0: i32) -> (i32, i32) {
    %c0_i32 = arith.constant 0 : i32
    %c0_i32_0 = arith.constant 0 : i32
    %c0_i32_1 = arith.constant 0 : i32
    return %c0_i32, %c0_i32_0 : i32, i32
  }
  func.func @transform_2(%arg0: i32) -> i32 {
    %c0_i32 = arith.constant 0 : i32
    %c0_i32_0 = arith.constant 0 : i32
    return %c0_i32 : i32
  }
  func.func @transform_3(%arg0: i32) -> (i32, i32, i32) {
    %c0_i32 = arith.constant 0 : i32
    %c0_i32_0 = arith.constant 0 : i32
    %c0_i32_1 = arith.constant 0 : i32
    return %arg0, %c0_i32, %c0_i32_0 : i32, i32, i32
  }
}

</mosaic_0001>

<bundles_post_ra>
// kernel: tpu_custom_call.1
= control target key start
LH: loop header
LB: loop body
LE: loop exit
PB: predicated region body
PF: predicated region fallthrough
CT: control target
= control target key end

     0   :  { %8 = vsyncpa [#allocation4], 0  ;;  %s3492_s0 = inlined_call_operand.hbm [shape: f32[2,1,256], index: 0, kind: input, shape index: {}]   ;;  %s3493_s1 = inlined_call_operand.hbm [shape: f32[88,256], index: 1, kind: input, shape index: {}]   ;;  %s3494_s2 = inlined_call_operand.vmem [shape: f32[4], index: 2, kind: input, shape index: {}]   ;;  %s3495_s3 = inlined_call_operand.hbm [shape: f32[2,1,256], index: 3, kind: output, shape index: {}]  }
   0x1   :  { %9 = vsyncpa [#allocation8], 0 }
   0x2   :  { %10 = vsyncpa [#allocation6], 0 }
   0x3   :  { %11 = vsyncpa [#allocation5], 0  ;;  %s16_s14 = sshll.u32 %s3492_s0, 4  ;;  %s2404_s15 = smov [#allocation3]   ;;  %s17_s14 = int_to_ptr.hbm [resolvable:$true] %s16_s14 }
   0x4   :  { %s18_s16 = sshll.u32 %s2404_s15, 4  ;;  %s29_s19 = sshll.u32 %s3493_s1, 4  ;;  %s19_s16 = int_to_ptr.vmem [resolvable:$true] %s18_s16  ;;  %s30_s19 = int_to_ptr.hbm [resolvable:$true] %s29_s19 }
   0x5   :  { %s2405_s20 = smov 32   ;;  %s2406_s21 = smov 2  }
   0x6   :  { %24 = dma.hbm_to_vmem [thread:$0]  %s17_s14, 64, %s19_s16, [#allocation4], %s2405_s20, %s2405_s20, %s2406_s21  }
   0x7   :  { %s2407_s22 = smov [#allocation7]   ;;  %s2408_s24 = smov 256  }
   0x8   :  { %s31_s23 = sshll.u32 %s2407_s22, 4  ;;  %s2409_s0 = smov 16   ;;  %s32_s23 = int_to_ptr.vmem [resolvable:$true] %s31_s23 }
   0x9   :  { %37 = dma.hbm_to_vmem [thread:$0]  %s30_s19, 2816, %s32_s23, [#allocation8], %s2408_s24, %s2408_s24, %s2409_s0  }
   0xa   :  { %s43_s27 = sshll.u32 %s3494_s2, 4  ;;  %s2410_s1 = smov [#allocation9]   ;;  %s44_s27 = int_to_ptr.vmem [resolvable:$true] %s43_s27 }
   0xb   :  { %46 = dma.vmem_to_smem %s44_s27, 16, %s2410_s1, [#allocation6]  }
   0xc   :  { %2396 = dma.done.wait [#allocation4], 64  }
   0xd   :  { %2397 = vsyncadd [#allocation4], 4294967232 }
   0xe   :  { %2398 = dma.done.wait [#allocation8], 2816  }
   0xf   :  { %2399 = vsyncadd [#allocation8], 4294964480 }
  0x10   :  { %2400 = dma.done.wait [#allocation6], 16  }
  0x11   :  { %2401 = vsyncadd [#allocation6], 4294967280 }
  0x12   :  { %59 = sfence }
  0x13   :  { %v109_v0 = vld [vmem:[#allocation7 + $0x90] sm:$0xff]  ;;  %v110_v1 = vld [vmem:[#allocation7 + $0x98] sm:$0xff]  ;;  %v111_v8 = vld [vmem:[#allocation7 + $0xa0] sm:$0xff]  ;;  %s2411_s2 = smov 1   ;;  %s2412_s28 = smov 127   ;;  %v60_v21 = vlaneseq  ;;  %vm3496_vm10 = vcmask 588800  }
  0x14   :  { %v113_v2 = vld [vmem:[#allocation3] sm:$0x3]  ;;  %v942_v3 = vld [vmem:[#allocation3 + $0x2] sm:$0x3]  ;;  %v112_v9 = vld [vmem:[#allocation7 + $0xa8] sm:$0xff]  ;;  %s2413_s29 = smov 113  }
  0x15   :  { %v115_v4 = vperm.slane %v113_v2, 0  ;;  %v116_v5 = vperm.slane %v113_v2, 1  ;;  %v944_v6 = vperm.slane %v942_v3, 0  ;;  %v945_v7 = vperm.slane %v942_v3, 1  ;;  %s2414_s30 = smov 15   ;;  %s2415_s4 = smov 112  }
  0x16   :  { %v2471_v22 = vand.u32 127, %v60_v21  ;;  %s91_s5 = sld [smem:[#allocation9]]  ;;  %vm505_vm15 = vcmask 130048   ;;  %s2416_s9 = smov [#allocation10]  }
  0x17   :  { %v119_v10 = vmul.f32 %v115_v4, %v109_v0  ;;  %v120_v11 = vmul.f32 %v116_v5, %v110_v1  ;;  %v948_v12 = vmul.f32 %v944_v6, %v109_v0  ;;  %v949_v13 = vmul.f32 %v945_v7, %v110_v1  ;;  %s1752_s6 = sld [smem:[#allocation9 + $0x1]]  ;;  %s1735_s10 = sshll.u32 %s2416_s9, 4  ;;  %s1736_s10 = int_to_ptr.vmem [resolvable:$true] %s1735_s10 }
  0x18   :  { %v62_v25 = vadd.s32 128, %v2471_v22  ;;  %v67_v26 = vand.u32 15, %v2471_v22  ;;  %vm3500_vm0 = vcmp.lt.s32.totalorder %v2471_v22, 1  ;;  %vm136_vm1 = vcmp.lt.s32.totalorder %v2471_v22, 113  ;;  %s1753_s7 = sld [smem:[#allocation9 + $0x2]]  ;;  %s1737_s13 = sshll.u32 %s3495_s3, 4  ;;  %s1738_s13 = int_to_ptr.hbm [resolvable:$true] %s1737_s13 }
  0x19   :  { %v2450_v14 = vadd.f32 %v119_v10, %v111_v8  ;;  %v2452_v15 = vadd.f32 %v120_v11, %v112_v9  ;;  %v2454_v16 = vadd.f32 %v948_v12, %v111_v8  ;;  %v2456_v17 = vadd.f32 %v949_v13, %v112_v9  ;;  %s1754_s8 = sld [smem:[#allocation9 + $0x3]] }
  0x1a   :  { %v74_v27 = vand.u32 15, %v62_v25  ;;  %vm187_vm2 = vcmp.lt.s32.totalorder %v2471_v22, 127  ;;  %vm3499_vm3 = vcmp.lt.s32.totalorder %v2471_v22, 15  ;;  %vm2479_vm4 = vcmp.eq.s32.totalorder %v67_v26, 15 }
  0x1b   :  { %v123_v18 = vmax.f32 %v2450_v14, 0.0  ;;  %v124_v19 = vmax.f32 %v2452_v15, 0.0  ;;  %vm2487_vm6 = vcmp.eq.s32.totalorder %v67_v26, 0  ;;  %vm3498_vm8 = vcmp.lt.s32.totalorder %v2471_v22, 112  ;;  %v2549_v15 = vld [vmem:[#allocation7] sm:$0xff] }
  0x1c   :  { %vm2483_vm5 = vcmp.eq.s32.totalorder %v74_v27, 15  ;;  %vm2491_vm7 = vcmp.eq.s32.totalorder %v74_v27, 0  ;;  %vm3497_vm9 = vcmp.lt.s32.totalorder %v2471_v22, 16  ;;  %v2559_v27 = vld [vmem:[#allocation7 + $0x10] sm:$0xff] }
  0x1d   :  { %v1802_v20 = vpack.i.bf16 %v124_v19, %v123_v18 }
  0x1f   :  { %1803 = vrot.lane.b32.xlu1 %v1802_v20, %s2411_s2  ;;  %1793 = vrot.lane.b32.xlu0 %v1802_v20, %s2412_s28 }
  0x27   :  { %1808 = vrot.lane.b32.xlu1 %v1802_v20, %s2413_s29  ;;  %1798 = vrot.lane.b32.xlu0 %v1802_v20, %s2414_s30 }
  0x2f   :  { %1813 = vrot.lane.b32.xlu0 %v1802_v20, %s2415_s4  ;;  %1818 = vrot.lane.b32.xlu1 %v1802_v20, %s2409_s0 }
  0x91   :  { %v1804_v23 = vpop.permute.xlu1 %1803  ;;  %v1794_v24 = vpop.permute.xlu0 %1793 }
  0x92   :  { %v1806_v28 = vunpack.i.h.bf16 %v1804_v23  ;;  %v1805_v29 = vunpack.i.l.bf16 %v1804_v23  ;;  %v1796_v30 = vunpack.i.h.bf16 %v1794_v24  ;;  %v1795_v31 = vunpack.i.l.bf16 %v1794_v24 }
  0x94   :  { %v188_v42 = vsel %vm187_vm2, %v1795_v31, %v1796_v30  ;;  %v189_v43 = vsel %vm187_vm2, %v1796_v30, %v1795_v31  ;;  %v130_v44 = vsel %vm3500_vm0, %v1805_v29, %v1806_v28  ;;  %v131_v45 = vsel %vm3500_vm0, %v1806_v28, %v1805_v29  ;;  %v2565_v28 = vld [vmem:[#allocation7 + $0x50] sm:$0xff]  ;;  %v2567_v29 = vld [vmem:[#allocation7 + $0x58] sm:$0xff] }
  0x95   :  { %v2569_v31 = vstv %s91_s5 }
  0x99   :  { %v1809_v32 = vpop.permute.xlu1 %1808  ;;  %v1799_v33 = vpop.permute.xlu0 %1798 }
  0x9a   :  { %v1811_v38 = vunpack.i.h.bf16 %v1809_v32  ;;  %v1810_v39 = vunpack.i.l.bf16 %v1809_v32  ;;  %v1801_v40 = vunpack.i.h.bf16 %v1799_v33  ;;  %v1800_v41 = vunpack.i.l.bf16 %v1799_v33 }
  0x9c   :  { %v195_v46 = vsel %vm3499_vm3, %v1800_v41, %v1801_v40  ;;  %v196_v47 = vsel %vm3499_vm3, %v1801_v40, %v1800_v41  ;;  %v137_v48 = vsel %vm136_vm1, %v1810_v39, %v1811_v38  ;;  %v138_v49 = vsel %vm136_vm1, %v1811_v38, %v1810_v39 }
  0x9d   :  { %v201_v50 = vsel %vm2479_vm4, %v196_v47, %v188_v42  ;;  %v202_v51 = vsel %vm2483_vm5, %v195_v46, %v189_v43  ;;  %v143_v52 = vsel %vm2487_vm6, %v137_v48, %v131_v45  ;;  %v144_v53 = vsel %vm2491_vm7, %v138_v49, %v130_v44  ;;  %v2579_v43 = vld [vmem:[#allocation7 + $0x60] sm:$0xff]  ;;  %v2581_v44 = vld [vmem:[#allocation7 + $0x68] sm:$0xff] }
  0x9e   :  { %v1822_v54 = vpack.i.bf16 %v202_v51, %v201_v50  ;;  %v1837_v55 = vpack.i.bf16 %v144_v53, %v143_v52 }
  0xa0   :  { %1823 = vrot.lane.b32.xlu2 %v1822_v54, %s2415_s4  ;;  %1838 = vrot.lane.b32.xlu0 %v1837_v55, %s2409_s0 }
  0xa1   :  { %v1814_v61 = vpop.permute.xlu0 %1813  ;;  %v1819_v0 = vpop.permute.xlu1 %1818 }
  0xa2   :  { %v1816_v62 = vunpack.i.h.bf16 %v1814_v61  ;;  %v1815_v63 = vunpack.i.l.bf16 %v1814_v61  ;;  %v1821_v4 = vunpack.i.h.bf16 %v1819_v0  ;;  %v1820_v5 = vunpack.i.l.bf16 %v1819_v0 }
  0xa4   :  { %v179_v8 = vsel %vm3498_vm8, %v1815_v63, %v1816_v62  ;;  %v180_v9 = vsel %vm3498_vm8, %v1816_v62, %v1815_v63  ;;  %v170_v10 = vsel %vm3497_vm9, %v1821_v4, %v1820_v5  ;;  %v169_v11 = vsel %vm3497_vm9, %v1820_v5, %v1821_v4 }
  0xa8   :  { %1828 = vrot.lane.b32.xlu2 %v1822_v54, %s2409_s0 }
  0xb0   :  { %1833 = vrot.lane.b32.xlu2 %v1837_v55, %s2415_s4 }
  0xfa   :  { %v1824_v56 = vpop.permute.xlu2 %1823 }
  0xfb   :  { %v1826_v57 = vunpack.i.h.bf16 %v1824_v56  ;;  %v1825_v58 = vunpack.i.l.bf16 %v1824_v56 }
  0xfd   :  { %v217_v59 = vsel %vm3498_vm8, %v1825_v58, %v1826_v57  ;;  %v218_v60 = vsel %vm3498_vm8, %v1826_v57, %v1825_v58 }
  0xfe   :  { %253 = vmatpush.msra.mxu0 %v217_v59  ;;  %276 = vmatpush.msra.mxu1 %v218_v60 }
 0x100   :  { %254 = vmatpush.msra.mxu0 %v201_v50  ;;  %277 = vmatpush.msra.mxu1 %v202_v51 }
 0x102   :  { %v1829_v1 = vpop.permute.xlu2 %1828 }
 0x103   :  { %v1831_v2 = vunpack.i.h.bf16 %v1829_v1  ;;  %v1830_v3 = vunpack.i.l.bf16 %v1829_v1 }
 0x105   :  { %v208_v6 = vsel %vm3497_vm9, %v1831_v2, %v1830_v3  ;;  %v207_v7 = vsel %vm3497_vm9, %v1830_v3, %v1831_v2 }
 0x106   :  { %255 = vmatpush.msra.mxu0 %v208_v6  ;;  %278 = vmatpush.msra.mxu1 %v207_v7 }
 0x108   :  { %256 = vmatpush.msra.mxu0 %v179_v8  ;;  %279 = vmatpush.msra.mxu1 %v180_v9 }
 0x10a   :  { %257 = vmatpush.msra.mxu0 %v123_v18  ;;  %280 = vmatpush.msra.mxu1 %v124_v19  ;;  %v1834_v12 = vpop.permute.xlu2 %1833 }
 0x10b   :  { %v1836_v13 = vunpack.i.h.bf16 %v1834_v12  ;;  %v1835_v20 = vunpack.i.l.bf16 %v1834_v12 }
 0x10c   :  { %258 = vmatpush.msra.mxu0 %v170_v10  ;;  %281 = vmatpush.msra.mxu1 %v169_v11 }
 0x10d   :  { %v161_v23 = vsel %vm3498_vm8, %v1835_v20, %v1836_v13  ;;  %v162_v24 = vsel %vm3498_vm8, %v1836_v13, %v1835_v20 }
 0x10e   :  { %259 = vmatpush.msra.mxu0 %v161_v23  ;;  %282 = vmatpush.msra.mxu1 %v162_v24 }
 0x110   :  { %260 = vmatpush.msra.mxu0 %v143_v52  ;;  %283 = vmatpush.msra.mxu1 %v144_v53 }
 0x112   :  { %v1839_v14 = vpop.permute.xlu0 %1838 }
 0x113   :  { %v1841_v18 = vunpack.i.h.bf16 %v1839_v14  ;;  %v1840_v25 = vunpack.i.l.bf16 %v1839_v14 }
 0x115   :  { %v151_v19 = vsel %vm3497_vm9, %v1841_v18, %v1840_v25  ;;  %v150_v26 = vsel %vm3497_vm9, %v1840_v25, %v1841_v18 }
 0x116   :  { %261 = vmatpush.msra.mxu0 %v151_v19  ;;  %284 = vmatpush.msra.mxu1 %v150_v26 }
 0x117   :  { %1755 = vmatmul.msk.f32.vlgmr.msra.gmra.mxu0 %vm3496_vm10, %v2549_v15  ;;  %1757 = vmatmul.msk.f32.vlgmr.msra.gmra.mxu1 %vm3496_vm10, %v2549_v15 }
 0x11f   :  { %1756 = vmatmul.msk.f32.gmra.mxu0 %vm3496_vm10, %v2559_v27  ;;  %1758 = vmatmul.msk.f32.gmra.mxu1 %vm3496_vm10, %v2559_v27 }
 0x194   :  { %v263_v30 = vpop.f32.mrf.mxu0  ;;  %v286_v32 = vpop.f32.mrf.mxu1 }
 0x195   :  { %v264_v33 = vadd.f32 %v263_v30, %v2565_v28  ;;  %v287_v38 = vadd.f32 %v286_v32, %v2567_v29 }
 0x197   :  { %vm292_vm11 = vcmp.ge.f32.partialorder %v264_v33, 0.0  ;;  %v297_v39 = vmul.f32 %v2569_v31, %v264_v33  ;;  %vm293_vm12 = vcmp.ge.f32.partialorder %v287_v38, 0.0  ;;  %v298_v40 = vmul.f32 %v2569_v31, %v287_v38 }
 0x199   :  { %v2575_v41 = vsel %vm292_vm11, %v264_v33, %v297_v39  ;;  %v2577_v42 = vsel %vm293_vm12, %v287_v38, %v298_v40 }
 0x19a   :  { %v2585_v45 = vpack.i.bf16 %v2577_v42, %v2575_v41 }
 0x19c   :  { %v266_v46 = vpop.f32.mrf.mxu0  ;;  %v289_v47 = vpop.f32.mrf.mxu1  ;;  %1853 = vrot.lane.b32.xlu0 %v2585_v45, %s2412_s28 }
 0x19d   :  { %v267_v48 = vadd.f32 %v266_v46, %v2579_v43  ;;  %v290_v49 = vadd.f32 %v289_v47, %v2581_v44 }
 0x19f   :  { %vm294_vm13 = vcmp.ge.f32.partialorder %v267_v48, 0.0  ;;  %v299_v50 = vmul.f32 %v2569_v31, %v267_v48  ;;  %vm295_vm14 = vcmp.ge.f32.partialorder %v290_v49, 0.0  ;;  %v300_v51 = vmul.f32 %v2569_v31, %v290_v49 }
 0x1a1   :  { %v2593_v52 = vsel %vm294_vm13, %v267_v48, %v299_v50  ;;  %v2595_v53 = vsel %vm295_vm14, %v290_v49, %v300_v51 }
 0x1a2   :  { %v2599_v54 = vpack.i.bf16 %v2595_v53, %v2593_v52 }
 0x1a4   :  { %1848 = vrot.lane.b32.xlu2 %v2599_v54, %s2414_s30  ;;  %1843 = vrot.lane.b32.xlu1 %v2599_v54, %s2412_s28 }
 0x1a5   :  { %1868 = vrot.lane.b32.xlu0 %v2599_v54, %s2413_s29 }
 0x1ac   :  { %1863 = vrot.lane.b32.xlu2 %v2599_v54, %s2411_s2  ;;  %1858 = vrot.lane.b32.xlu1 %v2585_v45, %s2414_s30 }
 0x1b4   :  { %1878 = vrot.lane.b32.xlu2 %v2585_v45, %s2413_s29  ;;  %1873 = vrot.lane.b32.xlu1 %v2585_v45, %s2411_s2 }
 0x1bc   :  { %1883 = vrot.lane.b32.xlu2 %v2599_v54, %s2415_s4 }
 0x1c4   :  { %1908 = vrot.lane.b32.xlu2 %v2585_v45, %s2409_s0 }
 0x1fe   :  { %v1849_v55 = vpop.permute.xlu2 %1848 }
 0x1ff   :  { %v1851_v57 = vunpack.i.h.bf16 %v1849_v55  ;;  %v1850_v58 = vunpack.i.l.bf16 %v1849_v55 }
 0x201   :  { %v428_v0 = vsel %vm3499_vm3, %v1851_v57, %v1850_v58  ;;  %v426_v2 = vsel %vm3499_vm3, %v1850_v58, %v1851_v57 }
 0x206   :  { %v1864_v62 = vpop.permute.xlu2 %1863 }
 0x207   :  { %v1866_v26 = vunpack.i.h.bf16 %v1864_v62  ;;  %v1865_v30 = vunpack.i.l.bf16 %v1864_v62 }
 0x209   :  { %v314_v47 = vsel %vm3500_vm0, %v1865_v30, %v1866_v26  ;;  %v316_v48 = vsel %vm3500_vm0, %v1866_v26, %v1865_v30 }
 0x20e   :  { %v1854_v56 = vpop.permute.xlu0 %1853  ;;  %v1879_v18 = vpop.permute.xlu2 %1878 }
 0x20f   :  { %v1856_v6 = vunpack.i.h.bf16 %v1854_v56  ;;  %v1855_v7 = vunpack.i.l.bf16 %v1854_v56  ;;  %v1881_v33 = vunpack.i.h.bf16 %v1879_v18  ;;  %v1880_v38 = vunpack.i.l.bf16 %v1879_v18 }
 0x211   :  { %v413_v12 = vsel %vm187_vm2, %v1855_v7, %v1856_v6  ;;  %v415_v13 = vsel %vm187_vm2, %v1856_v6, %v1855_v7  ;;  %v327_v56 = vsel %vm136_vm1, %v1881_v33, %v1880_v38 }
 0x216   :  { %v1844_v59 = vpop.permute.xlu1 %1843 }
 0x217   :  { %v1846_v60 = vunpack.i.h.bf16 %v1844_v59  ;;  %v1845_v61 = vunpack.i.l.bf16 %v1844_v59  ;;  %v1869_v8 = vpop.permute.xlu0 %1868 }
 0x218   :  { %v1871_v20 = vunpack.i.h.bf16 %v1869_v8  ;;  %v1870_v23 = vunpack.i.l.bf16 %v1869_v8 }
 0x219   :  { %v414_v63 = vsel %vm187_vm2, %v1845_v61, %v1846_v60  ;;  %v416_v1 = vsel %vm187_vm2, %v1846_v60, %v1845_v61 }
 0x21a   :  { %v431_v3 = vsel %vm2479_vm4, %v428_v0, %v414_v63  ;;  %v2631_v4 = vsel %vm2483_vm5, %v426_v2, %v416_v1  ;;  %v326_v39 = vsel %vm136_vm1, %v1870_v23, %v1871_v20  ;;  %v328_v40 = vsel %vm136_vm1, %v1871_v20, %v1870_v23  ;;  %v2701_v2 = vpop.permute.xlu2 %1883 }
 0x21b   :  { %509 = vmatpush.msra.mxu2 %v431_v3  ;;  %v1892_v5 = vpack.i.bf16 %v2631_v4, %v431_v3  ;;  %v2663_v51 = vsel %vm2487_vm6, %v326_v39, %v316_v48  ;;  %v2667_v55 = vsel %vm2491_vm7, %v328_v40, %v314_v47  ;;  %v1886_v6 = vunpack.i.h.bf16 %v2701_v2 }
 0x21c   :  { %v1917_v62 = vpack.i.bf16 %v2667_v55, %v2663_v51  ;;  %v1885_v7 = vunpack.i.l.bf16 %v2701_v2 }
 0x21d   :  { %1893 = vrot.lane.b32.xlu0 %v1892_v5, %s2409_s0 }
 0x21e   :  { %v1859_v9 = vpop.permute.xlu1 %1858  ;;  %v398_v20 = vsel %vm3498_vm8, %v1885_v7, %v1886_v6 }
 0x21f   :  { %v1861_v10 = vunpack.i.h.bf16 %v1859_v9  ;;  %v1860_v11 = vunpack.i.l.bf16 %v1859_v9 }
 0x221   :  { %v427_v24 = vsel %vm3499_vm3, %v1861_v10, %v1860_v11  ;;  %v425_v14 = vsel %vm3499_vm3, %v1860_v11, %v1861_v10 }
 0x222   :  { %v429_v25 = vsel %vm2479_vm4, %v427_v24, %v413_v12  ;;  %v2647_v19 = vsel %vm2483_vm5, %v425_v14, %v415_v13  ;;  %v2725_v13 = vpop.permute.xlu2 %1908 }
 0x223   :  { %510 = vmatpush.msra.mxu2 %v429_v25  ;;  %v1887_v32 = vpack.i.bf16 %v2647_v19, %v429_v25  ;;  %v1911_v26 = vunpack.i.h.bf16 %v2725_v13  ;;  %v1910_v30 = vunpack.i.l.bf16 %v2725_v13  ;;  %v106_v13 = vld [vmem:[#allocation7 + $0x78] sm:$0xff] }
 0x225   :  { %1898 = vrot.lane.b32.xlu0 %v2585_v45, %s2415_s4  ;;  %1888 = vrot.lane.b32.xlu1 %v1887_v32, %s2409_s0  ;;  %v325_v45 = vsel %vm136_vm1, %v1880_v38, %v1881_v33 }
 0x226   :  { %v1874_v46 = vpop.permute.xlu1 %1873 }
 0x227   :  { %v1876_v49 = vunpack.i.h.bf16 %v1874_v46  ;;  %v1875_v50 = vunpack.i.l.bf16 %v1874_v46 }
 0x229   :  { %v313_v57 = vsel %vm3500_vm0, %v1875_v50, %v1876_v49  ;;  %v315_v58 = vsel %vm3500_vm0, %v1876_v49, %v1875_v50 }
 0x22a   :  { %v2679_v59 = vsel %vm2487_vm6, %v325_v45, %v315_v58  ;;  %v2683_v60 = vsel %vm2491_vm7, %v327_v56, %v313_v57 }
 0x22b   :  { %v1912_v61 = vpack.i.bf16 %v2683_v60, %v2679_v59 }
 0x22d   :  { %1913 = vrot.lane.b32.xlu2 %v1912_v61, %s2415_s4  ;;  %1918 = vrot.lane.b32.xlu0 %v1917_v62, %s2415_s4 }
 0x22e   :  { %1903 = vrot.lane.b32.xlu1 %v2599_v54, %s2409_s0 }
 0x235   :  { %1938 = vrot.lane.b32.xlu2 %v1912_v61, %s2409_s0  ;;  %1923 = vrot.lane.b32.xlu0 %v1887_v32, %s2415_s4 }
 0x236   :  { %1928 = vrot.lane.b32.xlu1 %v1892_v5, %s2415_s4 }
 0x23e   :  { %1933 = vrot.lane.b32.xlu1 %v1917_v62, %s2409_s0 }
 0x287   :  { %v2748_v32 = vpop.permute.xlu2 %1913 }
 0x288   :  { %v1915_v40 = vunpack.i.l.bf16 %v2748_v32 }
 0x28f   :  { %v2697_v63 = vpop.permute.xlu0 %1893 }
 0x290   :  { %v1896_v0 = vunpack.i.h.bf16 %v2697_v63  ;;  %v1895_v1 = vunpack.i.l.bf16 %v2697_v63 }
 0x292   :  { %v444_v54 = vsel %vm3497_vm9, %v1896_v0, %v1895_v1 }
 0x293   :  { %511 = vmatpush.msra.mxu2 %v444_v54 }
 0x297   :  { %v2709_v3 = vpop.permute.xlu0 %1898  ;;  %v2711_v5 = vpop.permute.xlu1 %1888 }
 0x298   :  { %v1891_v8 = vunpack.i.h.bf16 %v2711_v5  ;;  %v1890_v9 = vunpack.i.l.bf16 %v2711_v5  ;;  %v1901_v10 = vunpack.i.h.bf16 %v2709_v3  ;;  %v1900_v11 = vunpack.i.l.bf16 %v2709_v3 }
 0x299   :  { %v377_v3 = vsel %vm3497_vm9, %v1910_v30, %v1911_v26 }
 0x29a   :  { %v443_v12 = vsel %vm3497_vm9, %v1891_v8, %v1890_v9  ;;  %v397_v23 = vsel %vm3498_vm8, %v1900_v11, %v1901_v10 }
 0x29b   :  { %512 = vmatpush.msra.mxu2 %v443_v12  ;;  %v98_v12 = vld [vmem:[#allocation7 + $0x28] sm:$0xff] }
 0x29d   :  { %513 = vmatpush.msra.mxu2 %v398_v20  ;;  %v1939_v20 = vpop.permute.xlu2 %1938 }
 0x29f   :  { %v2739_v24 = vpop.permute.xlu0 %1918  ;;  %514 = vmatpush.msra.mxu2 %v397_v23 }
 0x2a0   :  { %v2741_v14 = vpop.permute.xlu1 %1903  ;;  %v1921_v33 = vunpack.i.h.bf16 %v2739_v24  ;;  %v1920_v38 = vunpack.i.l.bf16 %v2739_v24  ;;  %v1940_v24 = vunpack.i.l.bf16 %v1939_v20 }
 0x2a1   :  { %v1906_v18 = vunpack.i.h.bf16 %v2741_v14  ;;  %v1905_v25 = vunpack.i.l.bf16 %v2741_v14  ;;  %515 = vmatpush.msra.mxu2 %v2593_v52  ;;  %v1916_v52 = vunpack.i.h.bf16 %v2748_v32 }
 0x2a2   :  { %v362_v48 = vsel %vm3498_vm8, %v1920_v38, %v1921_v33  ;;  %v364_v5 = vsel %vm3498_vm8, %v1921_v33, %v1920_v38 }
 0x2a3   :  { %516 = vmatpush.msra.mxu2 %v2575_v41  ;;  %v380_v39 = vsel %vm3497_vm9, %v1906_v18, %v1905_v25  ;;  %v379_v41 = vsel %vm3497_vm9, %v1911_v26, %v1910_v30  ;;  %v361_v57 = vsel %vm3498_vm8, %v1915_v40, %v1916_v52  ;;  %v378_v2 = vsel %vm3497_vm9, %v1905_v25, %v1906_v18 }
 0x2a4   :  { %v2843_v18 = vstv %s1752_s6 }
 0x2a5   :  { %517 = vmatpush.msra.mxu2 %v380_v39 }
 0x2a7   :  { %v1924_v46 = vpop.permute.xlu0 %1923  ;;  %518 = vmatpush.msra.mxu2 %v379_v41  ;;  %v441_v41 = vsel %vm3497_vm9, %v1890_v9, %v1891_v8  ;;  %v953_v8 = vmax.f32 %v2456_v17, 0.0  ;;  %v3037_v17 = vld [vmem:[#allocation7 + $0x80] sm:$0xff] }
 0x2a8   :  { %v1929_v47 = vpop.permute.xlu1 %1928  ;;  %v1926_v49 = vunpack.i.h.bf16 %v1924_v46  ;;  %v1925_v50 = vunpack.i.l.bf16 %v1924_v46 }
 0x2a9   :  { %v1931_v45 = vunpack.i.h.bf16 %v1929_v47  ;;  %v1930_v56 = vunpack.i.l.bf16 %v1929_v47  ;;  %519 = vmatpush.msra.mxu2 %v362_v48 }
 0x2aa   :  { %v461_v62 = vsel %vm3498_vm8, %v1925_v50, %v1926_v49  ;;  %v463_v54 = vsel %vm3498_vm8, %v1926_v49, %v1925_v50 }
 0x2ab   :  { %520 = vmatpush.msra.mxu2 %v361_v57  ;;  %v462_v58 = vsel %vm3498_vm8, %v1930_v56, %v1931_v45  ;;  %v464_v61 = vsel %vm3498_vm8, %v1931_v45, %v1930_v56 }
 0x2ac   :  { %543 = vmatpush.msra.mxu3 %v462_v58  ;;  %583 = vmatpush.msrb.mxu0 %v464_v61 }
 0x2ad   :  { %521 = vmatpush.msra.mxu2 %v2663_v51  ;;  %v1941_v51 = vunpack.i.h.bf16 %v1939_v20 }
 0x2ae   :  { %544 = vmatpush.msra.mxu3 %v461_v62  ;;  %584 = vmatpush.msrb.mxu0 %v463_v54 }
 0x2af   :  { %522 = vmatpush.msra.mxu2 %v2679_v59  ;;  %1759 = vmatmul.msk.f32.vlgmr.msra.gmra.mxu3 %vm505_vm15, %v98_v12  ;;  %v343_v63 = vsel %vm3497_vm9, %v1941_v51, %v1940_v24 }
 0x2b0   :  { %549 = vmatpush.msrb.mxu3 %v2631_v4  ;;  %v1934_v23 = vpop.permute.xlu1 %1933  ;;  %1760 = vmatmul.msk.f32.vlgmr.msrb.gmra.mxu0 %vm505_vm15, %v98_v12  ;;  %v442_v4 = vsel %vm3497_vm9, %v1895_v1, %v1896_v0  ;;  %v400_v0 = vsel %vm3498_vm8, %v1886_v6, %v1885_v7  ;;  %v399_v1 = vsel %vm3498_vm8, %v1901_v10, %v1900_v11  ;;  %v952_v7 = vmax.f32 %v2454_v16, 0.0 }
 0x2b1   :  { %v1936_v32 = vunpack.i.h.bf16 %v1934_v23  ;;  %v1935_v39 = vunpack.i.l.bf16 %v1934_v23  ;;  %v341_v6 = vsel %vm3497_vm9, %v1940_v24, %v1941_v51 }
 0x2b2   :  { %550 = vmatpush.msrb.mxu3 %v2647_v19  ;;  %v97_v19 = vld [vmem:[#allocation7 + $0x20] sm:$0xff] }
 0x2b3   :  { %v344_v59 = vsel %vm3497_vm9, %v1936_v32, %v1935_v39 }
 0x2b4   :  { %551 = vmatpush.msrb.mxu3 %v442_v4  ;;  %523 = vmatpush.msra.mxu2 %v344_v59 }
 0x2b6   :  { %552 = vmatpush.msrb.mxu3 %v441_v41  ;;  %524 = vmatpush.msra.mxu2 %v343_v63 }
 0x2b7   :  { %525 = vmatmul.f32.vlgmr.msra.gmra.mxu2 %v97_v19 }
 0x2b8   :  { %553 = vmatpush.msrb.mxu3 %v400_v0 }
 0x2ba   :  { %554 = vmatpush.msrb.mxu3 %v399_v1 }
 0x2bc   :  { %555 = vmatpush.msrb.mxu3 %v2595_v53  ;;  %v342_v53 = vsel %vm3497_vm9, %v1935_v39, %v1936_v32 }
 0x2be   :  { %556 = vmatpush.msrb.mxu3 %v2577_v42  ;;  %v363_v42 = vsel %vm3498_vm8, %v1916_v52, %v1915_v40 }
 0x2c0   :  { %557 = vmatpush.msrb.mxu3 %v378_v2 }
 0x2c2   :  { %558 = vmatpush.msrb.mxu3 %v377_v3 }
 0x2c4   :  { %559 = vmatpush.msrb.mxu3 %v364_v5 }
 0x2c6   :  { %560 = vmatpush.msrb.mxu3 %v363_v42 }
 0x2c8   :  { %561 = vmatpush.msrb.mxu3 %v2667_v55  ;;  %v2839_v55 = vpack.i.bf16 %v953_v8, %v952_v7 }
 0x2ca   :  { %562 = vmatpush.msrb.mxu3 %v2683_v60  ;;  %1953 = vrot.lane.b32.xlu2 %v2839_v55, %s2412_s28  ;;  %v105_v60 = vld [vmem:[#allocation7 + $0x70] sm:$0xff] }
 0x2cc   :  { %563 = vmatpush.msrb.mxu3 %v342_v53 }
 0x2ce   :  { %564 = vmatpush.msrb.mxu3 %v341_v6 }
 0x2cf   :  { %565 = vmatmul.f32.vlgmr.msrb.gmra.mxu3 %v97_v19 }
 0x324   :  { %v1954_v48 = vpop.permute.xlu2 %1953 }
 0x325   :  { %v1956_v23 = vunpack.i.h.bf16 %v1954_v48  ;;  %v1955_v51 = vunpack.i.l.bf16 %v1954_v48 }
 0x327   :  { %v1008_v19 = vsel %vm187_vm2, %v1955_v51, %v1956_v23  ;;  %v1009_v2 = vsel %vm187_vm2, %v1956_v23, %v1955_v51 }
 0x32d   :  { %v586_v26 = vpop.f32.mrf.mxu0 }
 0x332   :  { %v546_v10 = vpop.f32.mrf.mxu3 }
 0x33a   :  { %v526_v9 = vpop.f32.mrf.mxu2 }
 0x33b   :  { %v527_v11 = vadd.f32 %v526_v9, %v105_v60 }
 0x33d   :  { %v547_v14 = vadd.f32 %v546_v10, %v527_v11 }
 0x33f   :  { %v592_v33 = vmul.f32 %v2843_v18, %v547_v14  ;;  %vm589_vm11 = vcmp.ge.f32.partialorder %v547_v14, 0.0 }
 0x341   :  { %v2847_v40 = vsel %vm589_vm11, %v547_v14, %v592_v33 }
 0x352   :  { %v566_v25 = vpop.f32.mrf.mxu3 }
 0x353   :  { %v567_v30 = vadd.f32 %v566_v25, %v106_v13 }
 0x355   :  { %v587_v38 = vadd.f32 %v586_v26, %v567_v30 }
 0x357   :  { %vm590_vm12 = vcmp.ge.f32.partialorder %v587_v38, 0.0  ;;  %v593_v52 = vmul.f32 %v2843_v18, %v587_v38 }
 0x359   :  { %v2849_v46 = vsel %vm590_vm12, %v587_v38, %v593_v52 }
 0x35a   :  { %v1967_v47 = vpack.i.bf16 %v2849_v46, %v2847_v40 }
 0x35c   :  { %1968 = vrot.lane.b32.xlu2 %v1967_v47, %s2413_s29  ;;  %1948 = vrot.lane.b32.xlu1 %v1967_v47, %s2414_s30 }
 0x35d   :  { %1943 = vrot.lane.b32.xlu0 %v1967_v47, %s2412_s28 }
 0x364   :  { %1963 = vrot.lane.b32.xlu1 %v1967_v47, %s2411_s2 }
 0x365   :  { %1958 = vrot.lane.b32.xlu0 %v2839_v55, %s2414_s30 }
 0x36c   :  { %1978 = vrot.lane.b32.xlu1 %v2839_v55, %s2413_s29 }
 0x36d   :  { %1973 = vrot.lane.b32.xlu0 %v2839_v55, %s2411_s2 }
 0x374   :  { %1983 = vrot.lane.b32.xlu1 %v1967_v47, %s2415_s4 }
 0x375   :  { %1998 = vrot.lane.b32.xlu0 %v1967_v47, %s2409_s0 }
 0x3b6   :  { %v1969_v61 = vpop.permute.xlu2 %1968 }
 0x3b7   :  { %v1971_v39 = vunpack.i.h.bf16 %v1969_v61  ;;  %v1970_v4 = vunpack.i.l.bf16 %v1969_v61 }
 0x3b9   :  { %v606_v3 = vsel %vm136_vm1, %v1970_v4, %v1971_v39  ;;  %v607_v53 = vsel %vm136_vm1, %v1971_v39, %v1970_v4 }
 0x3ce   :  { %v1949_v49 = vpop.permute.xlu1 %1948 }
 0x3cf   :  { %v1951_v50 = vunpack.i.h.bf16 %v1949_v49  ;;  %v1950_v45 = vunpack.i.l.bf16 %v1949_v49  ;;  %v1944_v56 = vpop.permute.xlu0 %1943 }
 0x3d0   :  { %v1946_v57 = vunpack.i.h.bf16 %v1944_v56  ;;  %v1945_v58 = vunpack.i.l.bf16 %v1944_v56 }
 0x3d1   :  { %v656_v62 = vsel %vm3499_vm3, %v1950_v45, %v1951_v50  ;;  %v657_v54 = vsel %vm3499_vm3, %v1951_v50, %v1950_v45 }
 0x3d2   :  { %v650_v12 = vsel %vm187_vm2, %v1945_v58, %v1946_v57  ;;  %v651_v20 = vsel %vm187_vm2, %v1946_v57, %v1945_v58 }
 0x3d3   :  { %v658_v24 = vsel %vm2479_vm4, %v657_v54, %v650_v12  ;;  %v659_v32 = vsel %vm2483_vm5, %v656_v62, %v651_v20 }
 0x3d4   :  { %v2007_v59 = vpack.i.bf16 %v659_v32, %v658_v24 }
 0x3d6   :  { %2008 = vrot.lane.b32.xlu0 %v2007_v59, %s2409_s0  ;;  %1988 = vrot.lane.b32.xlu2 %v2007_v59, %s2415_s4  ;;  %v1964_v41 = vpop.permute.xlu1 %1963 }
 0x3d7   :  { %v1966_v63 = vunpack.i.h.bf16 %v1964_v41  ;;  %v1965_v0 = vunpack.i.l.bf16 %v1964_v41  ;;  %v1959_v1 = vpop.permute.xlu0 %1958 }
 0x3d8   :  { %v1961_v5 = vunpack.i.h.bf16 %v1959_v1  ;;  %v1960_v42 = vunpack.i.l.bf16 %v1959_v1 }
 0x3d9   :  { %v600_v6 = vsel %vm3500_vm0, %v1965_v0, %v1966_v63  ;;  %v601_v60 = vsel %vm3500_vm0, %v1966_v63, %v1965_v0 }
 0x3da   :  { %v1014_v9 = vsel %vm3499_vm3, %v1960_v42, %v1961_v5  ;;  %v1015_v10 = vsel %vm3499_vm3, %v1961_v5, %v1960_v42  ;;  %v2897_v11 = vsel %vm2487_vm6, %v606_v3, %v601_v60  ;;  %v2901_v13 = vsel %vm2491_vm7, %v607_v53, %v600_v6 }
 0x3db   :  { %v2027_v14 = vpack.i.bf16 %v2901_v13, %v2897_v11  ;;  %v1016_v25 = vsel %vm2479_vm4, %v1015_v10, %v1008_v19  ;;  %v2909_v26 = vsel %vm2483_vm5, %v1014_v9, %v1009_v2 }
 0x3dc   :  { %v1992_v30 = vpack.i.bf16 %v2909_v26, %v1016_v25 }
 0x3dd   :  { %2028 = vrot.lane.b32.xlu1 %v2027_v14, %s2415_s4 }
 0x3de   :  { %2013 = vrot.lane.b32.xlu0 %v2839_v55, %s2415_s4  ;;  %1993 = vrot.lane.b32.xlu2 %v1992_v30, %s2415_s4  ;;  %v1979_v33 = vpop.permute.xlu1 %1978 }
 0x3df   :  { %v1981_v38 = vunpack.i.h.bf16 %v1979_v33  ;;  %v1980_v52 = vunpack.i.l.bf16 %v1979_v33  ;;  %v1974_v47 = vpop.permute.xlu0 %1973 }
 0x3e0   :  { %v1976_v48 = vunpack.i.h.bf16 %v1974_v47  ;;  %v1975_v49 = vunpack.i.l.bf16 %v1974_v47 }
 0x3e1   :  { %v964_v50 = vsel %vm136_vm1, %v1980_v52, %v1981_v38  ;;  %v965_v45 = vsel %vm136_vm1, %v1981_v38, %v1980_v52 }
 0x3e2   :  { %v958_v56 = vsel %vm3500_vm0, %v1975_v49, %v1976_v48  ;;  %v959_v57 = vsel %vm3500_vm0, %v1976_v48, %v1975_v49 }
 0x3e3   :  { %v2926_v58 = vsel %vm2487_vm6, %v964_v50, %v959_v57  ;;  %v2930_v61 = vsel %vm2491_vm7, %v965_v45, %v958_v56 }
 0x3e4   :  { %v2022_v62 = vpack.i.bf16 %v2930_v61, %v2926_v58 }
 0x3e5   :  { %2033 = vrot.lane.b32.xlu1 %v2027_v14, %s2409_s0 }
 0x3e6   :  { %2023 = vrot.lane.b32.xlu0 %v2022_v62, %s2415_s4  ;;  %2003 = vrot.lane.b32.xlu2 %v1992_v30, %s2409_s0  ;;  %v1984_v0 = vpop.permute.xlu1 %1983 }
 0x3e7   :  { %v1999_v41 = vpop.permute.xlu0 %1998  ;;  %v1986_v2 = vunpack.i.h.bf16 %v1984_v0  ;;  %v1985_v3 = vunpack.i.l.bf16 %v1984_v0 }
 0x3e8   :  { %v2001_v60 = vunpack.i.h.bf16 %v1999_v41  ;;  %v2000_v9 = vunpack.i.l.bf16 %v1999_v41  ;;  %v2990_v41 = vld [vmem:[#allocation7 + $0x30] sm:$0xff] }
 0x3e9   :  { %v642_v10 = vsel %vm3498_vm8, %v1985_v3, %v1986_v2  ;;  %v643_v14 = vsel %vm3498_vm8, %v1986_v2, %v1985_v3 }
 0x3ea   :  { %v633_v49 = vsel %vm3497_vm9, %v2001_v60, %v2000_v9  ;;  %v632_v50 = vsel %vm3497_vm9, %v2000_v9, %v2001_v60 }
 0x3ed   :  { %2038 = vrot.lane.b32.xlu1 %v2022_v62, %s2409_s0 }
 0x3ee   :  { %2018 = vrot.lane.b32.xlu2 %v2839_v55, %s2409_s0 }
 0x430   :  { %v1989_v54 = vpop.permute.xlu2 %1988 }
 0x431   :  { %v1991_v12 = vunpack.i.h.bf16 %v1989_v54  ;;  %v1990_v20 = vunpack.i.l.bf16 %v1989_v54 }
 0x433   :  { %v674_v23 = vsel %vm3498_vm8, %v1990_v20, %v1991_v12  ;;  %v675_v51 = vsel %vm3498_vm8, %v1991_v12, %v1990_v20 }
 0x434   :  { %706 = vmatpush.msrb.mxu1 %v674_v23  ;;  %726 = vmatpush.msrb.mxu2 %v675_v51 }
 0x436   :  { %707 = vmatpush.msrb.mxu1 %v658_v24  ;;  %727 = vmatpush.msrb.mxu2 %v659_v32 }
 0x438   :  { %v2944_v39 = vpop.permute.xlu2 %1993 }
 0x439   :  { %v1996_v4 = vunpack.i.h.bf16 %v2944_v39  ;;  %v1995_v59 = vunpack.i.l.bf16 %v2944_v39 }
 0x43b   :  { %v1032_v55 = vsel %vm3498_vm8, %v1995_v59, %v1996_v4 }
 0x43c   :  { %1061 = vmatpush.msra.mxu3 %v1032_v55 }
 0x43e   :  { %1062 = vmatpush.msra.mxu3 %v1016_v25 }
 0x440   :  { %v2954_v19 = vpop.permute.xlu2 %2003 }
 0x441   :  { %v2006_v24 = vunpack.i.h.bf16 %v2954_v19  ;;  %v2005_v32 = vunpack.i.l.bf16 %v2954_v19 }
 0x443   :  { %v1023_v63 = vsel %vm3497_vm9, %v2006_v24, %v2005_v32  ;;  %v1022_v0 = vsel %vm3497_vm9, %v2005_v32, %v2006_v24  ;;  %v3042_v32 = vld [vmem:[#allocation7 + $0x88] sm:$0xff] }
 0x444   :  { %1063 = vmatpush.msra.mxu3 %v1023_v63 }
 0x448   :  { %v2009_v1 = vpop.permute.xlu0 %2008  ;;  %v2019_v30 = vpop.permute.xlu2 %2018 }
 0x449   :  { %v2011_v5 = vunpack.i.h.bf16 %v2009_v1  ;;  %v2010_v42 = vunpack.i.l.bf16 %v2009_v1  ;;  %v2021_v57 = vunpack.i.h.bf16 %v2019_v30 }
 0x44b   :  { %v665_v53 = vsel %vm3497_vm9, %v2011_v5, %v2010_v42  ;;  %v664_v6 = vsel %vm3497_vm9, %v2010_v42, %v2011_v5 }
 0x44c   :  { %708 = vmatpush.msrb.mxu1 %v665_v53  ;;  %728 = vmatpush.msrb.mxu2 %v664_v6 }
 0x44e   :  { %709 = vmatpush.msrb.mxu1 %v642_v10  ;;  %729 = vmatpush.msrb.mxu2 %v643_v14 }
 0x44f   :  { %v2029_v25 = vpop.permute.xlu1 %2028 }
 0x450   :  { %v2031_v33 = vunpack.i.h.bf16 %v2029_v25  ;;  %v2030_v38 = vunpack.i.l.bf16 %v2029_v25  ;;  %v2014_v52 = vpop.permute.xlu0 %2013  ;;  %710 = vmatpush.msrb.mxu1 %v2847_v40  ;;  %730 = vmatpush.msrb.mxu2 %v2849_v46  ;;  %v2020_v40 = vunpack.i.l.bf16 %v2019_v30 }
 0x451   :  { %v2016_v47 = vunpack.i.h.bf16 %v2014_v52  ;;  %v2015_v48 = vunpack.i.l.bf16 %v2014_v52 }
 0x452   :  { %711 = vmatpush.msrb.mxu1 %v633_v49  ;;  %731 = vmatpush.msrb.mxu2 %v632_v50  ;;  %v624_v45 = vsel %vm3498_vm8, %v2030_v38, %v2031_v33  ;;  %v625_v56 = vsel %vm3498_vm8, %v2031_v33, %v2030_v38  ;;  %v991_v62 = vsel %vm3497_vm9, %v2021_v57, %v2020_v40 }
 0x453   :  { %v1000_v46 = vsel %vm3498_vm8, %v2015_v48, %v2016_v47 }
 0x454   :  { %712 = vmatpush.msrb.mxu1 %v624_v45  ;;  %732 = vmatpush.msrb.mxu2 %v625_v56 }
 0x455   :  { %1064 = vmatpush.msra.mxu3 %v1000_v46 }
 0x456   :  { %713 = vmatpush.msrb.mxu1 %v2897_v11  ;;  %733 = vmatpush.msrb.mxu2 %v2901_v13 }
 0x457   :  { %v2034_v54 = vpop.permute.xlu1 %2033  ;;  %1065 = vmatpush.msra.mxu3 %v952_v7  ;;  %v1033_v7 = vsel %vm3498_vm8, %v1996_v4, %v1995_v59  ;;  %v1001_v4 = vsel %vm3498_vm8, %v2016_v47, %v2015_v48 }
 0x458   :  { %v2036_v12 = vunpack.i.h.bf16 %v2034_v54  ;;  %v2035_v20 = vunpack.i.l.bf16 %v2034_v54  ;;  %v2024_v23 = vpop.permute.xlu0 %2023 }
 0x459   :  { %v2026_v51 = vunpack.i.h.bf16 %v2024_v23  ;;  %v2025_v55 = vunpack.i.l.bf16 %v2024_v23  ;;  %1066 = vmatpush.msra.mxu3 %v991_v62 }
 0x45a   :  { %v615_v11 = vsel %vm3497_vm9, %v2036_v12, %v2035_v20  ;;  %v614_v13 = vsel %vm3497_vm9, %v2035_v20, %v2036_v12 }
 0x45b   :  { %714 = vmatpush.msrb.mxu1 %v615_v11  ;;  %734 = vmatpush.msrb.mxu2 %v614_v13  ;;  %v982_v16 = vsel %vm3498_vm8, %v2025_v55, %v2026_v51 }
 0x45c   :  { %1067 = vmatpush.msra.mxu3 %v982_v16  ;;  %1762 = vmatmul.msk.f32.vlgmr.msrb.gmra.mxu2 %vm3496_vm10, %v2990_v41 }
 0x45d   :  { %1084 = vmatpush.msra.mxu2 %v1033_v7  ;;  %1761 = vmatmul.msk.f32.vlgmr.msrb.gmra.mxu1 %vm3496_vm10, %v2990_v41 }
 0x45e   :  { %1068 = vmatpush.msra.mxu3 %v2926_v58  ;;  %v983_v58 = vsel %vm3498_vm8, %v2026_v51, %v2025_v55 }
 0x45f   :  { %1085 = vmatpush.msra.mxu2 %v2909_v26  ;;  %v2039_v63 = vpop.permute.xlu1 %2038  ;;  %v990_v26 = vsel %vm3497_vm9, %v2020_v40, %v2021_v57 }
 0x460   :  { %v2041_v39 = vunpack.i.h.bf16 %v2039_v63  ;;  %v2040_v1 = vunpack.i.l.bf16 %v2039_v63 }
 0x461   :  { %1086 = vmatpush.msra.mxu2 %v1022_v0 }
 0x462   :  { %v973_v59 = vsel %vm3497_vm9, %v2041_v39, %v2040_v1  ;;  %v972_v19 = vsel %vm3497_vm9, %v2040_v1, %v2041_v39 }
 0x463   :  { %1087 = vmatpush.msra.mxu2 %v1001_v4  ;;  %1069 = vmatpush.msra.mxu3 %v973_v59 }
 0x464   :  { %1767 = vmatmul.msk.f32.vlgmr.msra.gmra.mxu3 %vm3496_vm10, %v2549_v15 }
 0x465   :  { %1088 = vmatpush.msra.mxu2 %v953_v8 }
 0x467   :  { %1089 = vmatpush.msra.mxu2 %v990_v26 }
 0x469   :  { %1090 = vmatpush.msra.mxu2 %v983_v58 }
 0x46b   :  { %1091 = vmatpush.msra.mxu2 %v2930_v61  ;;  %v3040_v61 = vstv %s1753_s7 }
 0x46c   :  { %1768 = vmatmul.msk.f32.gmra.mxu3 %vm3496_vm10, %v2559_v27 }
 0x46d   :  { %1092 = vmatpush.msra.mxu2 %v972_v19 }
 0x46e   :  { %1769 = vmatmul.msk.f32.vlgmr.msra.gmra.mxu2 %vm3496_vm10, %v2549_v15 }
 0x476   :  { %1770 = vmatmul.msk.f32.gmra.mxu2 %vm3496_vm10, %v2559_v27 }
 0x4da   :  { %v716_v8 = vpop.f32.mrf.mxu1 }
 0x4db   :  { %v717_v24 = vadd.f32 %v716_v8, %v3037_v17 }
 0x4dd   :  { %v742_v2 = vmul.f32 %v3040_v61, %v717_v24  ;;  %vm739_vm13 = vcmp.ge.f32.partialorder %v717_v24, 0.0 }
 0x4df   :  { %v736_v3 = vpop.f32.mrf.mxu2  ;;  %v3046_v15 = vsel %vm739_vm13, %v717_v24, %v742_v2 }
 0x4e0   :  { %v737_v5 = vadd.f32 %v736_v3, %v3042_v32 }
 0x4e2   :  { %vm740_vm14 = vcmp.ge.f32.partialorder %v737_v5, 0.0  ;;  %v743_v27 = vmul.f32 %v3040_v61, %v737_v5 }
 0x4e4   :  { %v3049_v42 = vsel %vm740_vm14, %v737_v5, %v743_v27 }
 0x4e5   :  { %v2042_v53 = vpack.i.bf16 %v3049_v42, %v3046_v15 }
 0x4e7   :  { %2043 = vrot.lane.b32.xlu1 %v2042_v53, %s2412_s28  ;;  %2048 = vrot.lane.b32.xlu2 %v2042_v53, %s2414_s30  ;;  %v1071_v6 = vpop.f32.mrf.mxu3 }
 0x4e8   :  { %v1072_v60 = vadd.f32 %v1071_v6, %v2565_v28 }
 0x4ea   :  { %v1104_v10 = vmul.f32 %v1072_v60, %v2569_v31  ;;  %vm1100_vm11 = vcmp.ge.f32.partialorder %v1072_v60, 0.0 }
 0x4ec   :  { %v3059_v33 = vsel %vm1100_vm11, %v1072_v60, %v1104_v10 }
 0x4ef   :  { %v1074_v25 = vpop.f32.mrf.mxu3 }
 0x4f0   :  { %v1075_v52 = vadd.f32 %v1074_v25, %v2579_v43 }
 0x4f1   :  { %v1094_v9 = vpop.f32.mrf.mxu2 }
 0x4f2   :  { %v1095_v14 = vadd.f32 %v1094_v9, %v2567_v29  ;;  %v1106_v48 = vmul.f32 %v1075_v52, %v2569_v31  ;;  %vm1102_vm13 = vcmp.ge.f32.partialorder %v1075_v52, 0.0 }
 0x4f4   :  { %vm1101_vm12 = vcmp.ge.f32.partialorder %v1095_v14, 0.0  ;;  %v1105_v30 = vmul.f32 %v1095_v14, %v2569_v31  ;;  %v3070_v50 = vsel %vm1102_vm13, %v1075_v52, %v1106_v48 }
 0x4f6   :  { %v3061_v38 = vsel %vm1101_vm12, %v1095_v14, %v1105_v30 }
 0x4f7   :  { %v2067_v47 = vpack.i.bf16 %v3061_v38, %v3059_v33 }
 0x4f9   :  { %v1097_v28 = vpop.f32.mrf.mxu2  ;;  %2068 = vrot.lane.b32.xlu1 %v2067_v47, %s2414_s30 }
 0x4fa   :  { %v1098_v29 = vadd.f32 %v1097_v28, %v2581_v44 }
 0x4fc   :  { %vm1103_vm14 = vcmp.ge.f32.partialorder %v1098_v29, 0.0  ;;  %v1107_v49 = vmul.f32 %v1098_v29, %v2569_v31 }
 0x4fe   :  { %v3072_v45 = vsel %vm1103_vm14, %v1098_v29, %v1107_v49 }
 0x4ff   :  { %v2057_v43 = vpack.i.bf16 %v3072_v45, %v3070_v50 }
 0x501   :  { %2058 = vrot.lane.b32.xlu0 %v2057_v43, %s2414_s30  ;;  %2053 = vrot.lane.b32.xlu2 %v2057_v43, %s2412_s28 }
 0x502   :  { %2083 = vrot.lane.b32.xlu1 %v2057_v43, %s2411_s2 }
 0x509   :  { %2063 = vrot.lane.b32.xlu0 %v2067_v47, %s2412_s28  ;;  %2073 = vrot.lane.b32.xlu2 %v2042_v53, %s2411_s2 }
 0x50a   :  { %2098 = vrot.lane.b32.xlu1 %v2067_v47, %s2413_s29 }
 0x511   :  { %2078 = vrot.lane.b32.xlu0 %v2042_v53, %s2413_s29  ;;  %2088 = vrot.lane.b32.xlu2 %v2057_v43, %s2413_s29 }
 0x512   :  { %2103 = vrot.lane.b32.xlu1 %v2067_v47, %s2415_s4 }
 0x519   :  { %2093 = vrot.lane.b32.xlu0 %v2067_v47, %s2411_s2  ;;  %2108 = vrot.lane.b32.xlu2 %v2042_v53, %s2415_s4 }
 0x51a   :  { %2123 = vrot.lane.b32.xlu1 %v2057_v43, %s2409_s0 }
 0x521   :  { %2113 = vrot.lane.b32.xlu0 %v2042_v53, %s2409_s0  ;;  %2118 = vrot.lane.b32.xlu2 %v2057_v43, %s2415_s4 }
 0x541   :  { %v2049_v31 = vpop.permute.xlu2 %2048 }
 0x542   :  { %v2051_v44 = vunpack.i.h.bf16 %v2049_v31  ;;  %v2050_v56 = vunpack.i.l.bf16 %v2049_v31 }
 0x544   :  { %v806_v62 = vsel %vm3499_vm3, %v2050_v56, %v2051_v44  ;;  %v807_v54 = vsel %vm3499_vm3, %v2051_v44, %v2050_v56 }
 0x559   :  { %v2044_v57 = vpop.permute.xlu1 %2043 }
 0x55a   :  { %v2046_v40 = vunpack.i.h.bf16 %v2044_v57  ;;  %v2045_v46 = vunpack.i.l.bf16 %v2044_v57 }
 0x55b   :  { %v2054_v11 = vpop.permute.xlu2 %2053 }
 0x55c   :  { %v800_v12 = vsel %vm187_vm2, %v2045_v46, %v2046_v40  ;;  %v801_v20 = vsel %vm187_vm2, %v2046_v40, %v2045_v46  ;;  %v2056_v16 = vunpack.i.h.bf16 %v2054_v11  ;;  %v2055_v7 = vunpack.i.l.bf16 %v2054_v11 }
 0x55d   :  { %v3100_v23 = vsel %vm2479_vm4, %v807_v54, %v800_v12  ;;  %v3104_v51 = vsel %vm2483_vm5, %v806_v62, %v801_v20 }
 0x55e   :  { %v2127_v55 = vpack.i.bf16 %v3104_v51, %v3100_v23  ;;  %v1223_v4 = vsel %vm187_vm2, %v2056_v16, %v2055_v7  ;;  %v1221_v26 = vsel %vm187_vm2, %v2055_v7, %v2056_v16 }
 0x560   :  { %2128 = vrot.lane.b32.xlu0 %v2127_v55, %s2415_s4 }
 0x563   :  { %v2074_v63 = vpop.permute.xlu2 %2073 }
 0x564   :  { %v2076_v43 = vunpack.i.h.bf16 %v2074_v63  ;;  %v2075_v31 = vunpack.i.l.bf16 %v2074_v63 }
 0x566   :  { %v751_v11 = vsel %vm3500_vm0, %v2076_v43, %v2075_v31 }
 0x568   :  { %2133 = vrot.lane.b32.xlu0 %v2127_v55, %s2409_s0  ;;  %v750_v55 = vsel %vm3500_vm0, %v2075_v31, %v2076_v43 }
 0x56b   :  { %v2069_v13 = vpop.permute.xlu1 %2068  ;;  %v2089_v60 = vpop.permute.xlu2 %2088 }
 0x56c   :  { %v2071_v2 = vunpack.i.h.bf16 %v2069_v13  ;;  %v2070_v3 = vunpack.i.l.bf16 %v2069_v13  ;;  %v2091_v48 = vunpack.i.h.bf16 %v2089_v60  ;;  %v2090_v29 = vunpack.i.l.bf16 %v2089_v60 }
 0x56e   :  { %v1232_v9 = vsel %vm3499_vm3, %v2070_v3, %v2071_v2  ;;  %v1234_v10 = vsel %vm3499_vm3, %v2071_v2, %v2070_v3  ;;  %v1133_v40 = vsel %vm136_vm1, %v2090_v29, %v2091_v48  ;;  %v1135_v46 = vsel %vm136_vm1, %v2091_v48, %v2090_v29 }
 0x570   :  { %2153 = vrot.lane.b32.xlu0 %v2067_v47, %s2409_s0 }
 0x573   :  { %v2059_v0 = vpop.permute.xlu0 %2058 }
 0x574   :  { %v2061_v39 = vunpack.i.h.bf16 %v2059_v0  ;;  %v2060_v1 = vunpack.i.l.bf16 %v2059_v0  ;;  %v2084_v5 = vpop.permute.xlu1 %2083 }
 0x575   :  { %v2086_v14 = vunpack.i.h.bf16 %v2084_v5  ;;  %v2085_v25 = vunpack.i.l.bf16 %v2084_v5 }
 0x576   :  { %v1233_v59 = vsel %vm3499_vm3, %v2060_v1, %v2061_v39  ;;  %v1235_v58 = vsel %vm3499_vm3, %v2061_v39, %v2060_v1  ;;  %vm933_vm3 = vcmask 1040384  }
 0x577   :  { %v1239_v19 = vsel %vm2483_vm5, %v1233_v59, %v1223_v4  ;;  %v3123_v8 = vsel %vm2479_vm4, %v1235_v58, %v1221_v26  ;;  %v1121_v44 = vsel %vm3500_vm0, %v2085_v25, %v2086_v14  ;;  %v1123_v56 = vsel %vm3500_vm0, %v2086_v14, %v2085_v25 }
 0x578   :  { %1352 = vmatpush.msrb.mxu3 %v1239_v19  ;;  %v2142_v24 = vpack.i.bf16 %v1239_v19, %v3123_v8  ;;  %v3153_v12 = vsel %vm2487_vm6, %v1133_v40, %v1123_v56  ;;  %v3157_v20 = vsel %vm2491_vm7, %v1135_v46, %v1121_v44 }
 0x579   :  { %v2167_v1 = vpack.i.bf16 %v3157_v20, %v3153_v12 }
 0x57a   :  { %2143 = vrot.lane.b32.xlu2 %v2142_v24, %s2409_s0 }
 0x57b   :  { %v2064_v27 = vpop.permute.xlu0 %2063 }
 0x57c   :  { %v2066_v53 = vunpack.i.h.bf16 %v2064_v27  ;;  %v2065_v6 = vunpack.i.l.bf16 %v2064_v27  ;;  %v2099_v7 = vpop.permute.xlu1 %2098 }
 0x57d   :  { %v2101_v4 = vunpack.i.h.bf16 %v2099_v7  ;;  %v2100_v59 = vunpack.i.l.bf16 %v2099_v7 }
 0x57e   :  { %v1222_v30 = vsel %vm187_vm2, %v2066_v53, %v2065_v6  ;;  %v1220_v52 = vsel %vm187_vm2, %v2065_v6, %v2066_v53 }
 0x57f   :  { %v1237_v47 = vsel %vm2483_vm5, %v1232_v9, %v1222_v30  ;;  %v3139_v28 = vsel %vm2479_vm4, %v1234_v10, %v1220_v52  ;;  %v1132_v2 = vsel %vm136_vm1, %v2100_v59, %v2101_v4  ;;  %v1134_v3 = vsel %vm136_vm1, %v2101_v4, %v2100_v59  ;;  %v2109_v9 = vpop.permute.xlu2 %2108 }
 0x580   :  { %1353 = vmatpush.msrb.mxu3 %v1237_v47  ;;  %v2137_v49 = vpack.i.bf16 %v1237_v47, %v3139_v28  ;;  %v2111_v44 = vunpack.i.h.bf16 %v2109_v9  ;;  %v2110_v56 = vunpack.i.l.bf16 %v2109_v9 }
 0x582   :  { %2138 = vrot.lane.b32.xlu1 %v2137_v49, %s2409_s0 }
 0x583   :  { %v2079_v57 = vpop.permute.xlu0 %2078 }
 0x584   :  { %v2081_v62 = vunpack.i.h.bf16 %v2079_v57  ;;  %v2080_v54 = vunpack.i.l.bf16 %v2079_v57 }
 0x586   :  { %v756_v13 = vsel %vm136_vm1, %v2080_v54, %v2081_v62  ;;  %v757_v16 = vsel %vm136_vm1, %v2081_v62, %v2080_v54 }
 0x587   :  { %v3169_v63 = vsel %vm2487_vm6, %v756_v13, %v751_v11  ;;  %v3173_v0 = vsel %vm2491_vm7, %v757_v16, %v750_v55  ;;  %v3205_v14 = vpop.permute.xlu2 %2118  ;;  %v2104_v11 = vpop.permute.xlu1 %2103 }
 0x588   :  { %v2147_v39 = vpack.i.bf16 %v3173_v0, %v3169_v63 }
 0x58a   :  { %2148 = vrot.lane.b32.xlu2 %v2147_v39, %s2415_s4  ;;  %2168 = vrot.lane.b32.xlu1 %v2167_v1, %s2415_s4 }
 0x58b   :  { %v2094_v26 = vpop.permute.xlu0 %2093 }
 0x58c   :  { %v2096_v58 = vunpack.i.h.bf16 %v2094_v26  ;;  %v2095_v19 = vunpack.i.l.bf16 %v2094_v26 }
 0x58e   :  { %v1120_v5 = vsel %vm3500_vm0, %v2095_v19, %v2096_v58  ;;  %v1122_v27 = vsel %vm3500_vm0, %v2096_v58, %v2095_v19  ;;  %v3235_v19 = vld [vmem:[#allocation7 + $0x40] sm:$0xff]  ;;  %vm3322_vm0 = vcmp.lt.s32.totalorder %v60_v21, 256 }
 0x58f   :  { %v3191_v53 = vsel %vm2487_vm6, %v1132_v2, %v1122_v27  ;;  %v3195_v6 = vsel %vm2491_vm7, %v1134_v3, %v1120_v5 }
 0x590   :  { %v2162_v60 = vpack.i.bf16 %v3195_v6, %v3191_v53 }
 0x592   :  { %2158 = vrot.lane.b32.xlu2 %v2147_v39, %s2409_s0  ;;  %2173 = vrot.lane.b32.xlu1 %v2167_v1, %s2409_s0 }
 0x593   :  { %2163 = vrot.lane.b32.xlu0 %v2162_v60, %s2415_s4  ;;  %v2114_v10 = vpop.permute.xlu0 %2113 }
 0x594   :  { %v2116_v54 = vunpack.i.h.bf16 %v2114_v10  ;;  %v2115_v55 = vunpack.i.l.bf16 %v2114_v10 }
 0x596   :  { %v783_v13 = vsel %vm3497_vm9, %v2116_v54, %v2115_v55  ;;  %v782_v16 = vsel %vm3497_vm9, %v2115_v55, %v2116_v54 }
 0x59a   :  { %2178 = vrot.lane.b32.xlu2 %v2142_v24, %s2415_s4  ;;  %2188 = vrot.lane.b32.xlu1 %v2137_v49, %s2415_s4 }
 0x59b   :  { %2183 = vrot.lane.b32.xlu0 %v2162_v60, %s2409_s0 }
 0x5d2   :  { %v2129_v25 = vpop.permute.xlu0 %2128 }
 0x5d3   :  { %v2131_v30 = vunpack.i.h.bf16 %v2129_v25  ;;  %v2130_v52 = vunpack.i.l.bf16 %v2129_v25 }
 0x5d4   :  { %v2144_v47 = vpop.permute.xlu2 %2143 }
 0x5d5   :  { %v2146_v48 = vunpack.i.h.bf16 %v2144_v47  ;;  %v2145_v29 = vunpack.i.l.bf16 %v2144_v47  ;;  %v824_v43 = vsel %vm3498_vm8, %v2130_v52, %v2131_v30  ;;  %v825_v24 = vsel %vm3498_vm8, %v2131_v30, %v2130_v52 }
 0x5d6   :  { %856 = vmatpush.msra.mxu0 %v824_v43  ;;  %876 = vmatpush.msra.mxu1 %v825_v24  ;;  %v2106_v30 = vunpack.i.h.bf16 %v2104_v11  ;;  %v2105_v52 = vunpack.i.l.bf16 %v2104_v11 }
 0x5d7   :  { %v1249_v49 = vsel %vm3497_vm9, %v2145_v29, %v2146_v48  ;;  %v1251_v60 = vsel %vm3497_vm9, %v2146_v48, %v2145_v29 }
 0x5d8   :  { %1354 = vmatpush.msrb.mxu3 %v1249_v49  ;;  %857 = vmatpush.msra.mxu0 %v3100_v23  ;;  %v792_v23 = vsel %vm3498_vm8, %v2110_v56, %v2111_v44  ;;  %v1204_v43 = vsel %vm3498_vm8, %v2105_v52, %v2106_v30 }
 0x5d9   :  { %877 = vmatpush.msra.mxu1 %v3104_v51  ;;  %v793_v51 = vsel %vm3498_vm8, %v2111_v44, %v2110_v56 }
 0x5da   :  { %v2134_v31 = vpop.permute.xlu0 %2133 }
 0x5db   :  { %v2136_v57 = vunpack.i.h.bf16 %v2134_v31  ;;  %v2135_v40 = vunpack.i.l.bf16 %v2134_v31  ;;  %v1206_v31 = vsel %vm3498_vm8, %v2106_v30, %v2105_v52 }
 0x5dd   :  { %v815_v46 = vsel %vm3497_vm9, %v2136_v57, %v2135_v40  ;;  %v814_v62 = vsel %vm3497_vm9, %v2135_v40, %v2136_v57 }
 0x5de   :  { %858 = vmatpush.msra.mxu0 %v815_v46  ;;  %878 = vmatpush.msra.mxu1 %v814_v62 }
 0x5e0   :  { %859 = vmatpush.msra.mxu0 %v792_v23  ;;  %879 = vmatpush.msra.mxu1 %v793_v51 }
 0x5e2   :  { %860 = vmatpush.msra.mxu0 %v3046_v15  ;;  %880 = vmatpush.msra.mxu1 %v3049_v42  ;;  %v2124_v15 = vpop.permute.xlu1 %2123  ;;  %v2154_v24 = vpop.permute.xlu0 %2153 }
 0x5e3   :  { %v2126_v44 = vunpack.i.h.bf16 %v2124_v15  ;;  %v2125_v56 = vunpack.i.l.bf16 %v2124_v15  ;;  %v2156_v57 = vunpack.i.h.bf16 %v2154_v24  ;;  %v2155_v40 = vunpack.i.l.bf16 %v2154_v24 }
 0x5e4   :  { %v2149_v7 = vpop.permute.xlu2 %2148  ;;  %861 = vmatpush.msra.mxu0 %v783_v13  ;;  %881 = vmatpush.msra.mxu1 %v782_v16 }
 0x5e5   :  { %v2151_v39 = vunpack.i.h.bf16 %v2149_v7  ;;  %v2150_v1 = vunpack.i.l.bf16 %v2149_v7  ;;  %v1187_v54 = vsel %vm3497_vm9, %v2126_v44, %v2125_v56  ;;  %v1185_v55 = vsel %vm3497_vm9, %v2125_v56, %v2126_v44 }
 0x5e7   :  { %v774_v4 = vsel %vm3498_vm8, %v2150_v1, %v2151_v39  ;;  %v775_v59 = vsel %vm3498_vm8, %v2151_v39, %v2150_v1 }
 0x5e8   :  { %862 = vmatpush.msra.mxu0 %v774_v4  ;;  %882 = vmatpush.msra.mxu1 %v775_v59 }
 0x5ea   :  { %863 = vmatpush.msra.mxu0 %v3169_v63  ;;  %883 = vmatpush.msra.mxu1 %v3173_v0  ;;  %v2121_v63 = vunpack.i.h.bf16 %v3205_v14  ;;  %v2120_v0 = vunpack.i.l.bf16 %v3205_v14 }
 0x5ec   :  { %v2159_v42 = vpop.permute.xlu2 %2158  ;;  %v1205_v48 = vsel %vm3498_vm8, %v2120_v0, %v2121_v63  ;;  %v1207_v29 = vsel %vm3498_vm8, %v2121_v63, %v2120_v0  ;;  %v2309_v63 = vld [vmem:[#allocation7 + $0x28] sm:$0xff] }
 0x5ed   :  { %v2161_v26 = vunpack.i.h.bf16 %v2159_v42  ;;  %v2160_v58 = vunpack.i.l.bf16 %v2159_v42 }
 0x5ef   :  { %v765_v2 = vsel %vm3497_vm9, %v2161_v26, %v2160_v58  ;;  %v764_v3 = vsel %vm3497_vm9, %v2160_v58, %v2161_v26 }
 0x5f0   :  { %864 = vmatpush.msra.mxu0 %v765_v2  ;;  %884 = vmatpush.msra.mxu1 %v764_v3 }
 0x5f1   :  { %1764 = vmatmul.msk.f32.vlgmr.msra.gmra.mxu1 %vm3496_vm10, %v3235_v19  ;;  %1763 = vmatmul.msk.f32.vlgmr.msra.gmra.mxu0 %vm3496_vm10, %v3235_v19 }
 0x5f2   :  { %1312 = vmatpush.msrb.mxu0 %v3123_v8 }
 0x5f4   :  { %1313 = vmatpush.msrb.mxu0 %v3139_v28  ;;  %v3249_v5 = vpop.permute.xlu2 %2178  ;;  %v2139_v27 = vpop.permute.xlu1 %2138 }
 0x5f5   :  { %v2181_v8 = vunpack.i.h.bf16 %v3249_v5  ;;  %v2180_v9 = vunpack.i.l.bf16 %v3249_v5  ;;  %v2141_v10 = vunpack.i.h.bf16 %v2139_v27  ;;  %v2140_v25 = vunpack.i.l.bf16 %v2139_v27 }
 0x5f6   :  { %1314 = vmatpush.msrb.mxu0 %v1251_v60  ;;  %v3317_v60 = vstv %s1754_s8 }
 0x5f7   :  { %v1250_v28 = vsel %vm3497_vm9, %v2141_v10, %v2140_v25  ;;  %v1269_v14 = vsel %vm3498_vm8, %v2180_v9, %v2181_v8  ;;  %v1248_v47 = vsel %vm3497_vm9, %v2140_v25, %v2141_v10  ;;  %v1271_v0 = vsel %vm3498_vm8, %v2181_v8, %v2180_v9 }
 0x5f8   :  { %1315 = vmatpush.msrb.mxu0 %v1250_v28  ;;  %1346 = vmatpush.msrb.mxu1 %v1269_v14 }
 0x5f9   :  { %1355 = vmatpush.msrb.mxu3 %v1248_v47 }
 0x5fa   :  { %1316 = vmatpush.msrb.mxu0 %v1205_v48 }
 0x5fb   :  { %1356 = vmatpush.msrb.mxu3 %v1207_v29 }
 0x5fc   :  { %v2169_v49 = vpop.permute.xlu1 %2168  ;;  %1317 = vmatpush.msrb.mxu0 %v1204_v43 }
 0x5fd   :  { %1357 = vmatpush.msrb.mxu3 %v1206_v31  ;;  %v2171_v46 = vunpack.i.h.bf16 %v2169_v49  ;;  %v2170_v62 = vunpack.i.l.bf16 %v2169_v49 }
 0x5fe   :  { %1318 = vmatpush.msrb.mxu0 %v3070_v50  ;;  %v1186_v50 = vsel %vm3497_vm9, %v2156_v57, %v2155_v40 }
 0x5ff   :  { %1358 = vmatpush.msrb.mxu3 %v3072_v45  ;;  %v1171_v13 = vsel %vm3498_vm8, %v2171_v46, %v2170_v62 }
 0x600   :  { %1319 = vmatpush.msrb.mxu0 %v3059_v33  ;;  %v1184_v33 = vsel %vm3497_vm9, %v2155_v40, %v2156_v57 }
 0x601   :  { %1359 = vmatpush.msrb.mxu3 %v3061_v38  ;;  %v1169_v38 = vsel %vm3498_vm8, %v2170_v62, %v2171_v46 }
 0x602   :  { %1320 = vmatpush.msrb.mxu0 %v1187_v54 }
 0x603   :  { %1360 = vmatpush.msrb.mxu3 %v1185_v55 }
 0x604   :  { %v2174_v23 = vpop.permute.xlu1 %2173  ;;  %1321 = vmatpush.msrb.mxu0 %v1186_v50 }
 0x605   :  { %v2164_v45 = vpop.permute.xlu0 %2163  ;;  %1361 = vmatpush.msrb.mxu3 %v1184_v33  ;;  %v2176_v39 = vunpack.i.h.bf16 %v2174_v23  ;;  %v2175_v1 = vunpack.i.l.bf16 %v2174_v23 }
 0x606   :  { %v2166_v51 = vunpack.i.h.bf16 %v2164_v45  ;;  %v2165_v11 = vunpack.i.l.bf16 %v2164_v45  ;;  %1322 = vmatpush.msrb.mxu0 %v1169_v38 }
 0x607   :  { %1362 = vmatpush.msrb.mxu3 %v1171_v13  ;;  %v1151_v2 = vsel %vm3497_vm9, %v2176_v39, %v2175_v1  ;;  %v1149_v3 = vsel %vm3497_vm9, %v2175_v1, %v2176_v39  ;;  %v2310_v1 = vld [vmem:[#allocation7 + $0x70] sm:$0xff] }
 0x608   :  { %v1168_v16 = vsel %vm3498_vm8, %v2165_v11, %v2166_v51  ;;  %v1170_v7 = vsel %vm3498_vm8, %v2166_v51, %v2165_v11 }
 0x609   :  { %1323 = vmatpush.msrb.mxu0 %v1168_v16  ;;  %1363 = vmatpush.msrb.mxu3 %v1170_v7 }
 0x60b   :  { %1324 = vmatpush.msrb.mxu0 %v3153_v12  ;;  %1364 = vmatpush.msrb.mxu3 %v3157_v20 }
 0x60c   :  { %v2189_v4 = vpop.permute.xlu1 %2188 }
 0x60d   :  { %v2191_v59 = vunpack.i.h.bf16 %v2189_v4  ;;  %v2190_v15 = vunpack.i.l.bf16 %v2189_v4  ;;  %v2184_v42 = vpop.permute.xlu0 %2183  ;;  %1325 = vmatpush.msrb.mxu0 %v3191_v53  ;;  %1365 = vmatpush.msrb.mxu3 %v3195_v6  ;;  %v2308_v6 = vld [vmem:[#allocation7 + $0x20] sm:$0xff] }
 0x60e   :  { %v2186_v26 = vunpack.i.h.bf16 %v2184_v42  ;;  %v2185_v58 = vunpack.i.l.bf16 %v2184_v42  ;;  %v2311_v42 = vld [vmem:[#allocation7 + $0x78] sm:$0xff] }
 0x60f   :  { %1326 = vmatpush.msrb.mxu0 %v1151_v2  ;;  %1366 = vmatpush.msrb.mxu3 %v1149_v3  ;;  %v1268_v12 = vsel %vm3498_vm8, %v2190_v15, %v2191_v59  ;;  %v1270_v27 = vsel %vm3498_vm8, %v2191_v59, %v2190_v15 }
 0x610   :  { %v1150_v20 = vsel %vm3497_vm9, %v2186_v26, %v2185_v58  ;;  %1347 = vmatpush.msrb.mxu1 %v1268_v12  ;;  %v1148_v53 = vsel %vm3497_vm9, %v2185_v58, %v2186_v26 }
 0x611   :  { %1327 = vmatpush.msrb.mxu0 %v1150_v20  ;;  %1367 = vmatpush.msrb.mxu3 %v1148_v53 }
 0x612   :  { %1328 = vmatmul.f32.vlgmr.msrb.gmra.mxu0 %v2308_v6  ;;  %1771 = vmatmul.msk.f32.vlgmr.msrb.gmra.mxu1 %vm505_vm15, %v2309_v63 }
 0x613   :  { %1368 = vmatmul.f32.vlgmr.msrb.gmra.mxu3 %v2308_v6  ;;  %1386 = vmatpush.msra.mxu1 %v1271_v0 }
 0x615   :  { %1387 = vmatpush.msra.mxu1 %v1270_v27 }
 0x61a   :  { %1772 = vmatmul.msk.f32.vlgmr.msra.gmra.mxu1 %vm505_vm15, %v2309_v63 }
 0x66e   :  { %v886_v10 = vpop.f32.mrf.mxu1  ;;  %v866_v30 = vpop.f32.mrf.mxu0 }
 0x66f   :  { %v891_v25 = vadd.f32 %v3317_v60, %v886_v10  ;;  %v890_v5 = vadd.f32 %v3317_v60, %v866_v30 }
 0x671   :  { %v1766_v52 = vmul.f32 -1.442695, %v891_v25  ;;  %v1765_v28 = vmul.f32 -1.442695, %v890_v5 }
 0x673   :  { %2292 = vpow2.f32 %v1766_v52 }
 0x674   :  { %2294 = vpow2.f32 %v1765_v28 }
 0x679   :  { %v2293_v8 = vpop.eup %2292 }
 0x67a   :  { %v2295_v9 = vpop.eup %2294  ;;  %v899_v14 = vadd.f32 1.0, %v2293_v8 }
 0x67b   :  { %v898_v47 = vadd.f32 1.0, %v2295_v9 }
 0x67c   :  { %2296 = vrcp.f32 %v899_v14  ;;  %vm920_vm15 = vweird.f32 %v899_v14  ;;  %v926_v49 = vand.u32 2147483648, %v899_v14  ;;  %v924_v56 = vand.u32 2147483647, %v899_v14 }
 0x67d   :  { %2298 = vrcp.f32 %v898_v47  ;;  %v911_v44 = vand.u32 2147483648, %v898_v47  ;;  %vm905_vm12 = vweird.f32 %v898_v47  ;;  %v909_v40 = vand.u32 2147483647, %v898_v47 }
 0x67e   :  { %v927_v54 = vor.u32 1.1754944e-38, %v926_v49  ;;  %vm925_vm9 = vcmp.eq.f32.partialorder %v924_v56, 8.507059e+37 }
 0x67f   :  { %v912_v55 = vor.u32 1.1754944e-38, %v911_v44  ;;  %vm910_vm8 = vcmp.eq.f32.partialorder %v909_v40, 8.507059e+37 }
 0x682   :  { %v2297_v48 = vpop.eup %2296 }
 0x683   :  { %v2299_v29 = vpop.eup %2298  ;;  %v916_v43 = vmul.f32 %v2297_v48, %v899_v14  ;;  %vm921_vm11 = vweird.f32 %v2297_v48 }
 0x684   :  { %v901_v24 = vmul.f32 %v2299_v29, %v898_v47  ;;  %vm906_vm13 = vweird.f32 %v2299_v29  ;;  %vm922_vm14 = vmor %vm920_vm15, %vm921_vm11  ;;  %vm3513_vm11 = vcmp.lt.s32.totalorder %v2471_v22, 15 }
 0x685   :  { %v917_v31 = vsub.f32 1.0, %v916_v43  ;;  %vm907_vm10 = vmor %vm905_vm12, %vm906_vm13  ;;  %vm3515_vm13 = vcmp.lt.s32.totalorder %v2471_v22, 112 }
 0x686   :  { %v902_v57 = vsub.f32 1.0, %v901_v24  ;;  %vm3514_vm12 = vmmov %vm3513_vm11 }
 0x687   :  { %v918_v46 = vmul.f32 %v2297_v48, %v917_v31 }
 0x688   :  { %v903_v62 = vmul.f32 %v2299_v29, %v902_v57 }
 0x689   :  { %v919_v50 = vadd.f32 %v2297_v48, %v918_v46 }
 0x68a   :  { %v904_v23 = vadd.f32 %v2299_v29, %v903_v62 }
 0x68b   :  { %v923_v33 = vsel %vm922_vm14, %v2297_v48, %v919_v50  ;;  %vm3516_vm14 = vmmov %vm3515_vm13 }
 0x68c   :  { %v908_v45 = vsel %vm907_vm10, %v2299_v29, %v904_v23  ;;  %v928_v38 = vsel %vm925_vm9, %v927_v54, %v923_v33  ;;  %vm3511_vm10 = vcmp.lt.s32.totalorder %v2471_v22, 1 }
 0x68d   :  { %v913_v51 = vsel %vm910_vm8, %v912_v55, %v908_v45  ;;  %v932_v11 = vrot.slane %v928_v38, 7  ;;  %vm3512_vm15 = vmmov %vm3511_vm10 }
 0x68f   :  { %v1329_v16 = vpop.f32.mrf.mxu0  ;;  %v1349_v7 = vpop.f32.mrf.mxu1  ;;  %v934_v39 = vsel %vm933_vm3, %v913_v51, %v932_v11 }
 0x690   :  { %940 = vst.msk [vmem:[#allocation10] sm:$0x3] %vm3322_vm0, %v934_v39  ;;  %v1330_v4 = vadd.f32 %v2310_v1, %v1329_v16 }
 0x692   :  { %v1350_v59 = vadd.f32 %v1349_v7, %v1330_v4 }
 0x694   :  { %v1394_v2 = vmul.f32 %v1350_v59, %v2843_v18  ;;  %vm1392_vm8 = vcmp.ge.f32.partialorder %v1350_v59, 0.0 }
 0x696   :  { %v1369_v15 = vpop.f32.mrf.mxu3  ;;  %v3331_v12 = vsel %vm1392_vm8, %v1350_v59, %v1394_v2  ;;  %vm3517_vm8 = vcmp.lt.s32.totalorder %v2471_v22, 16 }
 0x697   :  { %v1370_v26 = vadd.f32 %v2311_v42, %v1369_v15  ;;  %v1389_v58 = vpop.f32.mrf.mxu1 }
 0x699   :  { %v1390_v21 = vadd.f32 %v1389_v58, %v1370_v26 }
 0x69b   :  { %vm1393_vm9 = vcmp.ge.f32.partialorder %v1390_v21, 0.0  ;;  %v1395_v3 = vmul.f32 %v1390_v21, %v2843_v18 }
 0x69d   :  { %v3333_v20 = vsel %vm1393_vm9, %v1390_v21, %v1395_v3  ;;  %vm3518_vm9 = vmmov %vm3517_vm8 }
 0x69e   :  { %v2202_v53 = vpack.i.bf16 %v3333_v20, %v3331_v12 }
 0x6a0   :  { %2203 = vrot.lane.b32.xlu1 %v2202_v53, %s2411_s2  ;;  %2198 = vrot.lane.b32.xlu0 %v2202_v53, %s2414_s30 }
 0x6a1   :  { %2193 = vrot.lane.b32.xlu2 %v2202_v53, %s2412_s28 }
 0x6a9   :  { %2208 = vrot.lane.b32.xlu2 %v2202_v53, %s2413_s29 }
 0x6b1   :  { %2218 = vrot.lane.b32.xlu2 %v2202_v53, %s2415_s4 }
 0x6fb   :  { %v2194_v6 = vpop.permute.xlu2 %2193 }
 0x6fc   :  { %v2196_v18 = vunpack.i.h.bf16 %v2194_v6  ;;  %v2195_v0 = vunpack.i.l.bf16 %v2194_v6 }
 0x6fe   :  { %v1452_v47 = vsel %vm187_vm2, %v2195_v0, %v2196_v18  ;;  %v1453_v48 = vsel %vm187_vm2, %v2196_v18, %v2195_v0 }
 0x703   :  { %v2209_v63 = vpop.permute.xlu2 %2208 }
 0x704   :  { %v2211_v27 = vunpack.i.h.bf16 %v2209_v63  ;;  %v2210_v10 = vunpack.i.l.bf16 %v2209_v63 }
 0x706   :  { %v1408_v9 = vsel %vm136_vm1, %v2210_v10, %v2211_v27  ;;  %v1409_v14 = vsel %vm136_vm1, %v2211_v27, %v2210_v10 }
 0x70b   :  { %v2219_v23 = vpop.permute.xlu2 %2218 }
 0x70c   :  { %v2221_v11 = vunpack.i.h.bf16 %v2219_v23  ;;  %v2220_v16 = vunpack.i.l.bf16 %v2219_v23 }
 0x712   :  { %v2204_v25 = vpop.permute.xlu1 %2203  ;;  %v2199_v30 = vpop.permute.xlu0 %2198 }
 0x713   :  { %v2206_v5 = vunpack.i.h.bf16 %v2204_v25  ;;  %v2205_v52 = vunpack.i.l.bf16 %v2204_v25  ;;  %v2201_v28 = vunpack.i.h.bf16 %v2199_v30  ;;  %v2200_v8 = vunpack.i.l.bf16 %v2199_v30 }
 0x715   :  { %v1402_v29 = vsel %vm3511_vm10, %v2205_v52, %v2206_v5  ;;  %v1403_v43 = vsel %vm3512_vm15, %v2206_v5, %v2205_v52  ;;  %v1458_v24 = vsel %vm3513_vm11, %v2200_v8, %v2201_v28  ;;  %v1459_v49 = vsel %vm3514_vm12, %v2201_v28, %v2200_v8  ;;  %vm3519_vm10 = vmmov %vm3515_vm13 }
 0x716   :  { %v1410_v31 = vsel %vm2487_vm6, %v1408_v9, %v1403_v43  ;;  %v1411_v44 = vsel %vm2491_vm7, %v1409_v14, %v1402_v29  ;;  %v1460_v56 = vsel %vm2479_vm4, %v1459_v49, %v1452_v47  ;;  %v1461_v57 = vsel %vm2483_vm5, %v1458_v24, %v1453_v48  ;;  %vm3520_vm15 = vmmov %vm3519_vm10 }
 0x717   :  { %v2237_v40 = vpack.i.bf16 %v1411_v44, %v1410_v31  ;;  %v2227_v46 = vpack.i.bf16 %v1461_v57, %v1460_v56  ;;  %v1444_v42 = vsel %vm3519_vm10, %v2220_v16, %v2221_v11  ;;  %v1445_v26 = vsel %vm3520_vm15, %v2221_v11, %v2220_v16  ;;  %vm3521_vm11 = vmmov %vm3517_vm8 }
 0x718   :  { %vm3522_vm12 = vmmov %vm3517_vm8 }
 0x719   :  { %2238 = vrot.lane.b32.xlu2 %v2237_v40, %s2409_s0  ;;  %2228 = vrot.lane.b32.xlu1 %v2227_v46, %s2409_s0 }
 0x71a   :  { %2213 = vrot.lane.b32.xlu0 %v2227_v46, %s2415_s4 }
 0x721   :  { %2233 = vrot.lane.b32.xlu1 %v2237_v40, %s2415_s4 }
 0x722   :  { %2223 = vrot.lane.b32.xlu0 %v2202_v53, %s2409_s0 }
 0x773   :  { %v2239_v21 = vpop.permute.xlu2 %2238 }
 0x774   :  { %v2241_v6 = vunpack.i.h.bf16 %v2239_v21  ;;  %v2240_v63 = vunpack.i.l.bf16 %v2239_v21 }
 0x78b   :  { %v2229_v62 = vpop.permute.xlu1 %2228 }
 0x78c   :  { %v2214_v54 = vpop.permute.xlu0 %2213  ;;  %v2231_v33 = vunpack.i.h.bf16 %v2229_v62  ;;  %v2230_v45 = vunpack.i.l.bf16 %v2229_v62 }
 0x78d   :  { %v2216_v55 = vunpack.i.h.bf16 %v2214_v54  ;;  %v2215_v50 = vunpack.i.l.bf16 %v2214_v54 }
 0x78e   :  { %v1467_v7 = vsel %vm3517_vm8, %v2231_v33, %v2230_v45  ;;  %v1466_v39 = vsel %vm3518_vm9, %v2230_v45, %v2231_v33  ;;  %vm3525_vm9 = vmmov %vm3517_vm8 }
 0x78f   :  { %v1476_v38 = vsel %vm3515_vm13, %v2215_v50, %v2216_v55  ;;  %v1477_v51 = vsel %vm3516_vm14, %v2216_v55, %v2215_v50  ;;  %vm3523_vm13 = vmmov %vm3519_vm10 }
 0x790   :  { %1505 = vmatpush.msrb.mxu2 %v1476_v38  ;;  %1525 = vmatpush.msrb.mxu1 %v1477_v51  ;;  %vm3524_vm14 = vmmov %vm3519_vm10  ;;  %vm3526_vm10 = vcmask 588800  }
 0x791   :  { %vm3527_vm15 = vmmov %vm3526_vm10 }
 0x792   :  { %1506 = vmatpush.msrb.mxu2 %v1460_v56  ;;  %1526 = vmatpush.msrb.mxu1 %v1461_v57 }
 0x793   :  { %v2234_v1 = vpop.permute.xlu1 %2233 }
 0x794   :  { %v2224_v4 = vpop.permute.xlu0 %2223  ;;  %1507 = vmatpush.msrb.mxu2 %v1467_v7  ;;  %1527 = vmatpush.msrb.mxu1 %v1466_v39  ;;  %v2236_v58 = vunpack.i.h.bf16 %v2234_v1  ;;  %v2235_v2 = vunpack.i.l.bf16 %v2234_v1 }
 0x795   :  { %v2226_v59 = vunpack.i.h.bf16 %v2224_v4  ;;  %v2225_v15 = vunpack.i.l.bf16 %v2224_v4 }
 0x796   :  { %1508 = vmatpush.msrb.mxu2 %v1444_v42  ;;  %1528 = vmatpush.msrb.mxu1 %v1445_v26  ;;  %v1426_v18 = vsel %vm3523_vm13, %v2235_v2, %v2236_v58  ;;  %v1427_v0 = vsel %vm3524_vm14, %v2236_v58, %v2235_v2  ;;  %vm3528_vm13 = vcmp.lt.s32.totalorder %v2471_v22, 15 }
 0x797   :  { %v1435_v3 = vsel %vm3521_vm11, %v2226_v59, %v2225_v15  ;;  %v1434_v53 = vsel %vm3522_vm12, %v2225_v15, %v2226_v59  ;;  %vm3529_vm14 = vmmov %vm3528_vm13 }
 0x798   :  { %1509 = vmatpush.msrb.mxu2 %v3331_v12  ;;  %1529 = vmatpush.msrb.mxu1 %v3333_v20  ;;  %v1417_v12 = vsel %vm3517_vm8, %v2241_v6, %v2240_v63  ;;  %v1416_v20 = vsel %vm3525_vm9, %v2240_v63, %v2241_v6 }
 0x79a   :  { %1510 = vmatpush.msrb.mxu2 %v1435_v3  ;;  %1530 = vmatpush.msrb.mxu1 %v1434_v53 }
 0x79c   :  { %1511 = vmatpush.msrb.mxu2 %v1426_v18  ;;  %1531 = vmatpush.msrb.mxu1 %v1427_v0 }
 0x79e   :  { %1512 = vmatpush.msrb.mxu2 %v1410_v31  ;;  %1532 = vmatpush.msrb.mxu1 %v1411_v44 }
 0x7a0   :  { %1513 = vmatpush.msrb.mxu2 %v1417_v12  ;;  %1533 = vmatpush.msrb.mxu1 %v1416_v20 }
 0x7a1   :  { %1773 = vmatmul.msk.f32.vlgmr.msrb.gmra.mxu2 %vm3526_vm10, %v2990_v41  ;;  %1774 = vmatmul.msk.f32.vlgmr.msrb.gmra.mxu1 %vm3527_vm15, %v2990_v41 }
 0x81e   :  { %v1535_v27 = vpop.f32.mrf.mxu1 }
 0x81f   :  { %v1536_v10 = vadd.f32 %v1535_v27, %v3042_v32 }
 0x821   :  { %v1541_v5 = vmul.f32 %v1536_v10, %v3040_v61  ;;  %vm1539_vm11 = vcmp.ge.f32.partialorder %v1536_v10, 0.0 }
 0x823   :  { %v3407_v8 = vsel %vm1539_vm11, %v1536_v10, %v1541_v5 }
 0x824   :  { %v1515_v25 = vpop.f32.mrf.mxu2 }
 0x825   :  { %v1516_v30 = vadd.f32 %v1515_v25, %v3037_v17 }
 0x827   :  { %vm1538_vm12 = vcmp.ge.f32.partialorder %v1516_v30, 0.0  ;;  %v1540_v52 = vmul.f32 %v1516_v30, %v3040_v61 }
 0x829   :  { %v3405_v28 = vsel %vm1538_vm12, %v1516_v30, %v1540_v52 }
 0x82a   :  { %v2247_v9 = vpack.i.bf16 %v3407_v8, %v3405_v28 }
 0x82c   :  { %2248 = vrot.lane.b32.xlu1 %v2247_v9, %s2414_s30  ;;  %2243 = vrot.lane.b32.xlu0 %v2247_v9, %s2412_s28 }
 0x82d   :  { %2253 = vrot.lane.b32.xlu2 %v2247_v9, %s2411_s2 }
 0x834   :  { %2258 = vrot.lane.b32.xlu0 %v2247_v9, %s2413_s29 }
 0x83c   :  { %2268 = vrot.lane.b32.xlu0 %v2247_v9, %s2415_s4 }
 0x887   :  { %v2254_v49 = vpop.permute.xlu2 %2253 }
 0x888   :  { %v2256_v57 = vunpack.i.h.bf16 %v2254_v49  ;;  %v2255_v40 = vunpack.i.l.bf16 %v2254_v49 }
 0x89e   :  { %v2249_v41 = vpop.permute.xlu1 %2248  ;;  %v2244_v17 = vpop.permute.xlu0 %2243 }
 0x89f   :  { %v2251_v61 = vunpack.i.h.bf16 %v2249_v41  ;;  %v2250_v32 = vunpack.i.l.bf16 %v2249_v41  ;;  %v2246_v14 = vunpack.i.h.bf16 %v2244_v17  ;;  %v2245_v47 = vunpack.i.l.bf16 %v2244_v17 }
 0x8a1   :  { %v1598_v48 = vsel %vm187_vm2, %v2245_v47, %v2246_v14  ;;  %v1599_v29 = vsel %vm187_vm2, %v2246_v14, %v2245_v47  ;;  %v1604_v43 = vsel %vm3528_vm13, %v2250_v32, %v2251_v61  ;;  %v1605_v24 = vsel %vm3529_vm14, %v2251_v61, %v2250_v32 }
 0x8a2   :  { %v1606_v31 = vsel %vm2479_vm4, %v1605_v24, %v1598_v48  ;;  %v1607_v44 = vsel %vm2483_vm5, %v1604_v43, %v1599_v29  ;;  %vm3530_vm2 = vcmp.lt.s32.totalorder %v2471_v22, 1  ;;  %vm3534_vm5 = vmmov %vm3525_vm9 }
 0x8a3   :  { %v2272_v56 = vpack.i.bf16 %v1607_v44, %v1606_v31  ;;  %v1548_v55 = vsel %vm3530_vm2, %v2255_v40, %v2256_v57  ;;  %vm3531_vm8 = vmmov %vm3530_vm2  ;;  %vm3544_vm2 = vcmask 588800  }
 0x8a4   :  { %v1549_v34 = vsel %vm3531_vm8, %v2256_v57, %v2255_v40  ;;  %vm3538_vm10 = vmmov %vm3534_vm5 }
 0x8a5   :  { %2273 = vrot.lane.b32.xlu2 %v2272_v56, %s2409_s0  ;;  %2263 = vrot.lane.b32.xlu1 %v2272_v56, %s2415_s4  ;;  %vm3539_vm15 = vmmov %vm3534_vm5 }
 0x8a6   :  { %v2259_v46 = vpop.permute.xlu0 %2258  ;;  %vm3542_vm13 = vmmov %vm3534_vm5 }
 0x8a7   :  { %v2261_v62 = vunpack.i.h.bf16 %v2259_v46  ;;  %v2260_v54 = vunpack.i.l.bf16 %v2259_v46  ;;  %vm3543_vm14 = vmmov %vm3534_vm5 }
 0x8a8   :  { %vm3545_vm8 = vmmov %vm3544_vm2 }
 0x8a9   :  { %v1554_v35 = vsel %vm136_vm1, %v2260_v54, %v2261_v62  ;;  %v1555_v50 = vsel %vm136_vm1, %v2261_v62, %v2260_v54  ;;  %vm3532_vm1 = vcmp.lt.s32.totalorder %v2471_v22, 112 }
 0x8aa   :  { %v1556_v23 = vsel %vm2487_vm6, %v1554_v35, %v1549_v34  ;;  %v1557_v33 = vsel %vm2491_vm7, %v1555_v50, %v1548_v55  ;;  %vm3533_vm4 = vmmov %vm3532_vm1 }
 0x8ab   :  { %v2287_v45 = vpack.i.bf16 %v1557_v33, %v1556_v23  ;;  %vm3535_vm6 = vmmov %vm3534_vm5 }
 0x8ac   :  { %vm3536_vm7 = vmmov %vm3532_vm1 }
 0x8ad   :  { %2288 = vrot.lane.b32.xlu0 %v2287_v45, %s2409_s0  ;;  %2283 = vrot.lane.b32.xlu2 %v2287_v45, %s2415_s4  ;;  %vm3537_vm9 = vmmov %vm3532_vm1 }
 0x8ae   :  { %2278 = vrot.lane.b32.xlu1 %v2247_v9, %s2409_s0  ;;  %v2269_v7 = vpop.permute.xlu0 %2268  ;;  %vm3540_vm11 = vmmov %vm3532_vm1 }
 0x8af   :  { %v2271_v4 = vunpack.i.h.bf16 %v2269_v7  ;;  %v2270_v59 = vunpack.i.l.bf16 %v2269_v7  ;;  %vm3541_vm12 = vmmov %vm3532_vm1 }
 0x8b1   :  { %v1590_v2 = vsel %vm3536_vm7, %v2270_v59, %v2271_v4  ;;  %v1591_v21 = vsel %vm3537_vm9, %v2271_v4, %v2270_v59 }
 0x8ff   :  { %v2274_v38 = vpop.permute.xlu2 %2273 }
 0x900   :  { %v2276_v39 = vunpack.i.h.bf16 %v2274_v38  ;;  %v2275_v1 = vunpack.i.l.bf16 %v2274_v38 }
 0x902   :  { %v1613_v15 = vsel %vm3534_vm5, %v2276_v39, %v2275_v1  ;;  %v1612_v42 = vsel %vm3535_vm6, %v2275_v1, %v2276_v39 }
 0x907   :  { %v2284_v26 = vpop.permute.xlu2 %2283 }
 0x908   :  { %v2286_v6 = vunpack.i.h.bf16 %v2284_v26  ;;  %v2285_v63 = vunpack.i.l.bf16 %v2284_v26 }
 0x90a   :  { %v1572_v10 = vsel %vm3540_vm11, %v2285_v63, %v2286_v6  ;;  %v1573_v25 = vsel %vm3541_vm12, %v2286_v6, %v2285_v63 }
 0x917   :  { %v2264_v51 = vpop.permute.xlu1 %2263 }
 0x918   :  { %v2266_v11 = vunpack.i.h.bf16 %v2264_v51  ;;  %v2265_v16 = vunpack.i.l.bf16 %v2264_v51 }
 0x91a   :  { %v1622_v36 = vsel %vm3532_vm1, %v2265_v16, %v2266_v11  ;;  %v1623_v37 = vsel %vm3533_vm4, %v2266_v11, %v2265_v16 }
 0x91b   :  { %1651 = vmatpush.msra.mxu0 %v1622_v36  ;;  %1671 = vmatpush.msra.mxu2 %v1623_v37 }
 0x91d   :  { %1652 = vmatpush.msra.mxu0 %v1606_v31  ;;  %1672 = vmatpush.msra.mxu2 %v1607_v44 }
 0x91f   :  { %1653 = vmatpush.msra.mxu0 %v1613_v15  ;;  %1673 = vmatpush.msra.mxu2 %v1612_v42  ;;  %v2289_v18 = vpop.permute.xlu0 %2288 }
 0x920   :  { %v2279_v58 = vpop.permute.xlu1 %2278  ;;  %v2291_v20 = vunpack.i.h.bf16 %v2289_v18  ;;  %v2290_v27 = vunpack.i.l.bf16 %v2289_v18 }
 0x921   :  { %v2281_v3 = vunpack.i.h.bf16 %v2279_v58  ;;  %v2280_v53 = vunpack.i.l.bf16 %v2279_v58  ;;  %1654 = vmatpush.msra.mxu0 %v1590_v2  ;;  %1674 = vmatpush.msra.mxu2 %v1591_v21 }
 0x922   :  { %v1563_v30 = vsel %vm3542_vm13, %v2291_v20, %v2290_v27  ;;  %v1562_v5 = vsel %vm3543_vm14, %v2290_v27, %v2291_v20 }
 0x923   :  { %1655 = vmatpush.msra.mxu0 %v3405_v28  ;;  %1675 = vmatpush.msra.mxu2 %v3407_v8  ;;  %v1581_v0 = vsel %vm3538_vm10, %v2281_v3, %v2280_v53  ;;  %v1580_v12 = vsel %vm3539_vm15, %v2280_v53, %v2281_v3 }
 0x925   :  { %1656 = vmatpush.msra.mxu0 %v1581_v0  ;;  %1676 = vmatpush.msra.mxu2 %v1580_v12 }
 0x927   :  { %1657 = vmatpush.msra.mxu0 %v1572_v10  ;;  %1677 = vmatpush.msra.mxu2 %v1573_v25 }
 0x929   :  { %1658 = vmatpush.msra.mxu0 %v1556_v23  ;;  %1678 = vmatpush.msra.mxu2 %v1557_v33 }
 0x92b   :  { %1659 = vmatpush.msra.mxu0 %v1563_v30  ;;  %1679 = vmatpush.msra.mxu2 %v1562_v5 }
 0x92c   :  { %1775 = vmatmul.msk.f32.vlgmr.msra.gmra.mxu0 %vm3544_vm2, %v3235_v19  ;;  %1776 = vmatmul.msk.f32.vlgmr.msra.gmra.mxu2 %vm3545_vm8, %v3235_v19 }
 0x9a9   :  { %v1661_v52 = vpop.f32.mrf.mxu0 }
 0x9aa   :  { %v1684_v28 = vadd.f32 %v1661_v52, %v3317_v60 }
 0x9ac   :  { %v1777_v8 = vmul.f32 -1.442695, %v1684_v28 }
 0x9ae   :  { %2300 = vpow2.f32 %v1777_v8 }
 0x9af   :  { %v1681_v9 = vpop.f32.mrf.mxu2 }
 0x9b0   :  { %v1685_v41 = vadd.f32 %v1681_v9, %v3317_v60 }
 0x9b2   :  { %v1778_v17 = vmul.f32 -1.442695, %v1685_v41 }
 0x9b4   :  { %v2301_v61 = vpop.eup %2300  ;;  %2302 = vpow2.f32 %v1778_v17 }
 0x9b5   :  { %v1692_v22 = vadd.f32 1.0, %v2301_v61 }
 0x9b7   :  { %2304 = vrcp.f32 %v1692_v22  ;;  %vm1699_vm1 = vweird.f32 %v1692_v22  ;;  %v1705_v57 = vand.u32 2147483648, %v1692_v22  ;;  %v1703_v46 = vand.u32 2147483647, %v1692_v22 }
 0x9b9   :  { %v1706_v35 = vor.u32 1.1754944e-38, %v1705_v57  ;;  %vm1704_vm15 = vcmp.eq.f32.partialorder %v1703_v46, 8.507059e+37 }
 0x9ba   :  { %v2303_v32 = vpop.eup %2302 }
 0x9bb   :  { %v1693_v14 = vadd.f32 1.0, %v2303_v32 }
 0x9bd   :  { %v2305_v47 = vpop.eup %2304  ;;  %2306 = vrcp.f32 %v1693_v14  ;;  %v1720_v31 = vand.u32 2147483648, %v1693_v14  ;;  %v1718_v56 = vand.u32 2147483647, %v1693_v14  ;;  %vm1714_vm7 = vweird.f32 %v1693_v14 }
 0x9be   :  { %v1695_v48 = vmul.f32 %v2305_v47, %v1692_v22  ;;  %vm1700_vm4 = vweird.f32 %v2305_v47 }
 0x9bf   :  { %vm3477_vm6 = vmor %vm1699_vm1, %vm1700_vm4  ;;  %v1721_v54 = vor.u32 1.1754944e-38, %v1720_v31  ;;  %vm1719_vm10 = vcmp.eq.f32.partialorder %v1718_v56, 8.507059e+37 }
 0x9c0   :  { %v1696_v29 = vsub.f32 1.0, %v1695_v48 }
 0x9c2   :  { %v1697_v24 = vmul.f32 %v2305_v47, %v1696_v29 }
 0x9c3   :  { %v2307_v19 = vpop.eup %2306 }
 0x9c4   :  { %v1710_v43 = vmul.f32 %v2307_v19, %v1693_v14  ;;  %v1698_v44 = vadd.f32 %v2305_v47, %v1697_v24  ;;  %vm1715_vm5 = vweird.f32 %v2307_v19 }
 0x9c5   :  { %vm1716_vm9 = vmor %vm1714_vm7, %vm1715_vm5 }
 0x9c6   :  { %v1711_v49 = vsub.f32 1.0, %v1710_v43  ;;  %v1702_v55 = vsel %vm3477_vm6, %v2305_v47, %v1698_v44 }
 0x9c7   :  { %v1707_v33 = vsel %vm1704_vm15, %v1706_v35, %v1702_v55 }
 0x9c8   :  { %v1712_v60 = vmul.f32 %v2307_v19, %v1711_v49 }
 0x9ca   :  { %v1713_v62 = vadd.f32 %v2307_v19, %v1712_v60 }
 0x9cc   :  { %v1717_v34 = vsel %vm1716_vm9, %v2307_v19, %v1713_v62 }
 0x9cd   :  { %v1722_v50 = vsel %vm1719_vm10, %v1721_v54, %v1717_v34 }
 0x9ce   :  { %v1726_v23 = vrot.slane %v1722_v50, 7 }
 0x9d0   :  { %v1727_v45 = vsel %vm933_vm3, %v1707_v33, %v1726_v23 }
 0x9d1   :  { %1730 = vst.msk [vmem:[#allocation10 + $0x2] sm:$0x3] %vm3322_vm0, %v1727_v45 }
 0x9d2   :  { %1743 = dma.vmem_to_hbm [thread:$0]  %s1736_s10, 64, %s1738_s13, [#allocation5], %s2405_s20, %s2405_s20, %s2406_s21  }
 0x9d3   :  { %2402 = dma.done.wait [#allocation5], 64  }
 0x9d4   :  { %2403 = vsyncadd [#allocation5], 4294967232 }
 0x9d5   :  { %1748 = vsyncpa [#allocation4], 1 }
 0x9d6   :  { %1749 = vsyncpa [#allocation8], 1 }
 0x9d7   :  { %1750 = vsyncpa [#allocation5], 1 }
 0x9d8   :  { %1751 = vsyncpa [#allocation6], 1 }

</bundles_post_ra>
